<compile_context>
chip_gen: v5e
topology: v5e:2x2
jax: 0.10.0
libtpu: 0.0.40
codegen_flags: <defaults>
</compile_context>

<pallas_src>
import jax
import jax.numpy as jnp
import numpy as np
from jax import lax
from jax.experimental import pallas as pl
from jax.experimental.pallas import tpu as pltpu


# ---------------------------------------------------------------------------
# Network topology helpers
# ---------------------------------------------------------------------------
def _layer_configs(isize, nc, ndf):
    """Stride-2 conv configs [(H_in, C_in, C_out), ...] and final-conv C_in."""
    assert isize % 16 == 0, "isize has to be a multiple of 16"
    cfgs = [(isize, nc, ndf)]
    csize, cndf = isize // 2, ndf
    while csize > 4:
        cfgs.append((csize, cndf, cndf * 2))
        cndf *= 2
        csize //= 2
    return cfgs, cndf          # final layer: Conv2d(cndf, 1, 4, 1, 0, bias=False)


# ---------------------------------------------------------------------------
# In-kernel value-only building blocks (no scratch refs, no strided ref reads)
# ---------------------------------------------------------------------------
def _pad_s2d(h):
    """NHWC value (1, H, W, C) -> padded space-to-depth value (1, H/2+1, W/2+1, 4C).

    out[., qy, qx, (ry*2+rx)*C + c] == hpad[., 2*qy+ry, 2*qx+rx, c]
    where hpad is h zero-padded by 1 on every side.  Built purely from leading-dim
    reshapes, static slices and concatenations (no masked scatter stores, no memsets,
    no stride-2 gathers).
    """
    B, H, W, C = h.shape
    Hq, Wq = H // 2, W // 2

    # Row parity split: leading-dim reshape only (last two dims untouched).
    h5 = h.reshape(B, Hq, 2, W, C)
    even_r, odd_r = h5[:, :, 0], h5[:, :, 1]                 # (B, Hq, W, C)
    zr = jnp.zeros((B, 1, W, C), h.dtype)

    planes = []
    for t in (jnp.concatenate([zr, odd_r], axis=1),          # ry = 0 (even padded rows)
              jnp.concatenate([even_r, zr], axis=1)):        # ry = 1 (odd padded rows)
        # Column parity split.
        t5 = t.reshape(B, Hq + 1, Wq, 2, C)
        even_c, odd_c = t5[:, :, :, 0], t5[:, :, :, 1]       # (B, Hq+1, Wq, C)
        zc = jnp.zeros((B, Hq + 1, 1, C), h.dtype)
        planes.append(jnp.concatenate([zc, odd_c], axis=2))  # rx = 0
        planes.append(jnp.concatenate([even_c, zc], axis=2)) # rx = 1

    # Channel order (ry, rx, c) -- must match the weight repack in prepare_params.
    return jnp.concatenate(planes, axis=-1)                  # (B, Hq+1, Wq+1, 4C)


def _conv4x4_s2_lrelu(xs, w_mat):
    """Conv2d(Cin, Cout, 4, 2, 1, bias=False) + LeakyReLU(0.2) on a padded-s2d input.

    xs    : (1, P, P, 4*Cin) padded space-to-depth value (P = H_in/2 + 1).
    w_mat : (16*Cin, Cout) bf16, rows ordered (by, bx, ry, rx, cin).
    returns (1, P-1, P-1, Cout) float32.
    """
    B, P, _, D = xs.shape
    Q = P - 1
    # The 4x4 stride-2 conv is a 2x2 stride-1 VALID conv on the s2d view: four static
    # shifted slices concatenated along the lane dim -> register-resident im2col.
    cols = jnp.concatenate(
        [xs[:, 0:Q, 0:Q, :], xs[:, 0:Q, 1:P, :],
         xs[:, 1:P, 0:Q, :], xs[:, 1:P, 1:P, :]], axis=-1)    # (1, Q, Q, 16*Cin)
    h = jnp.dot(cols.reshape(B * Q * Q, 4 * D).astype(jnp.bfloat16), w_mat,
                preferred_element_type=jnp.float32)           # bf16 MXU, f32 accumulate
    h = jnp.maximum(h, 0.2 * h)                               # LeakyReLU(0.2), f32
    return h.reshape(B, Q, Q, w_mat.shape[1])


# ---------------------------------------------------------------------------
# Fused forward pass (single pallas_call, batch as a 'parallel' grid axis)
# ---------------------------------------------------------------------------
def make_dcgan_d_forward(B, isize, nc, ndf):
    cfgs, final_cin = _layer_configs(isize, nc, ndf)
    n = len(cfgs)

    def kernel(*refs):
        x_ref = refs[0]                 # (1, nc, isize, isize) f32 - one sample per step
        w_refs = refs[1:1 + n]          # (16*Cin, Cout) bf16 each
        wf_ref = refs[1 + n]            # (4, 4, final_cin) f32
        o_ref = refs[2 + n]             # (1, 1, 1) f32

        # NCHW -> NHWC folded into the kernel (no separate XLA transpose / HBM round trip).
        act = jnp.transpose(x_ref[...], (0, 2, 3, 1))         # (1, isize, isize, nc), f32

        for li in range(n):
            xs = _pad_s2d(act)
            act = _conv4x4_s2_lrelu(xs, w_refs[li][...])      # (1, H/2, H/2, Cout)

        # Final Conv2d(final_cin, 1, 4, 1, 0): full 4x4xC contraction -> per-sample scalar.
        # (batch mean over these scalars is done by the tiny wrapper reduce)
        s = jnp.sum(act * wf_ref[...])                        # scalar, f32
        o_ref[...] = s.reshape(1, 1, 1)

    in_specs = [pl.BlockSpec((1, nc, isize, isize), lambda b: (b, 0, 0, 0))]
    for (_, cin, cout) in cfgs:
        in_specs.append(pl.BlockSpec((16 * cin, cout), lambda b: (0, 0)))
    in_specs.append(pl.BlockSpec((4, 4, final_cin), lambda b: (0, 0, 0)))

    call = pl.pallas_call(
        kernel,
        out_shape=jax.ShapeDtypeStruct((B, 1, 1), jnp.float32),
        grid_spec=pltpu.PrefetchScalarGridSpec(
            num_scalar_prefetch=0,
            grid=(B,),
            in_specs=in_specs,
            out_specs=pl.BlockSpec((1, 1, 1), lambda b: (b, 0, 0)),
        ),
        compiler_params=pltpu.CompilerParams(
            dimension_semantics=("parallel",)),                # batch splits across cores
    )

    @jax.jit
    def forward(x_nchw, w_mats, wf):
        per_sample = call(x_nchw, *w_mats, wf)                 # (B, 1, 1) per-sample scalars
        return (jnp.sum(per_sample) * (1.0 / B)).reshape(1)    # == main(x).mean(0).view(1)

    return forward


# ---------------------------------------------------------------------------
# Parameters (PyTorch layout) + one-time repack into kernel matmul form
# ---------------------------------------------------------------------------
def init_params(isize, nc, ndf, key):
    cfgs, final_cin = _layer_configs(isize, nc, ndf)
    ws = []
    for (_, cin, cout) in cfgs:
        key, sub = jax.random.split(key)
        ws.append(jax.random.normal(sub, (cout, cin, 4, 4), jnp.float32) * 0.02)
    key, sub = jax.random.split(key)
    wf = jax.random.normal(sub, (1, final_cin, 4, 4), jnp.float32) * 0.02
    return {"s2": ws, "final": wf}


def prepare_params(params):
    """One-time repack of the weights consumed by the fused kernel.

    Stride-2 conv weights (Cout, Cin, 4, 4) -> bf16 (16*Cin, Cout) matmul form whose rows
    are ordered (by, bx, ry, rx, cin) with ky = 2*by + ry, kx = 2*bx + rx, matching the
    padded space-to-depth im2col built in-kernel.  Final conv -> (4, 4, Cin_final) f32.
    """
    w_mats = []
    for w in params["s2"]:
        cout, cin = w.shape[0], w.shape[1]
        w6 = w.reshape(cout, cin, 2, 2, 2, 2)                   # (o, c, by, ry, bx, rx)
        wm = jnp.transpose(w6, (2, 4, 3, 5, 1, 0)).reshape(16 * cin, cout)
        w_mats.append(wm.astype(jnp.bfloat16))
    wf = jnp.transpose(params["final"][0], (1, 2, 0))           # (4, 4, Cin_final), f32
    return tuple(w_mats), wf


# ---------------------------------------------------------------------------
# Pure-JAX reference (same semantics as the PyTorch module, f32 everywhere)
# ---------------------------------------------------------------------------
def reference_forward(x_nchw, params):
    dn = ("NCHW", "OIHW", "NCHW")
    h = x_nchw
    for w in params["s2"]:
        h = lax.conv_general_dilated(h, w, (2, 2), ((1, 1), (1, 1)),
                                     dimension_numbers=dn)
        h = jnp.where(h > 0, h, 0.2 * h)                        # LeakyReLU(0.2)
    h = lax.conv_general_dilated(h, params["final"], (1, 1), "VALID",
                                 dimension_numbers=dn)          # (B, 1, 1, 1)
    return jnp.mean(h, axis=0).reshape(1)


if __name__ == "__main__":
    isize, nc, ndf, B = 16, 4, 8, 2
    key = jax.random.PRNGKey(0)
    k_in, k_par = jax.random.split(key)

    x = jax.random.normal(k_in, (B, nc, isize, isize), jnp.float32)   # NCHW, like the module
    params = init_params(isize, nc, ndf, k_par)
    w_mats, wf = prepare_params(params)

    forward = make_dcgan_d_forward(B, isize, nc, ndf)
    out = jax.block_until_ready(forward(x, w_mats, wf))
    assert out.shape == (1,), out.shape

    ref = jax.block_until_ready(reference_forward(x, params))
    # bf16 MXU operands vs. f32 reference -> loosened tolerances (per review caveat).
    assert np.allclose(np.asarray(out), np.asarray(ref), rtol=3e-2, atol=1e-3), (out, ref)

    print("KERNEL_OK")
</pallas_src>

<mosaic_0001>
module attributes {stable_mosaic.version = 11 : i64} {
  func.func @kernel(%arg0: i32, %arg1: memref<1x4x16x16xf32, #tpu.memory_space<vmem>>, %arg2: memref<64x8xbf16, #tpu.memory_space<vmem>>, %arg3: memref<128x16xbf16, #tpu.memory_space<vmem>>, %arg4: memref<4x4x16xf32, #tpu.memory_space<vmem>>, %arg5: memref<1x1x1xf32, #tpu.memory_space<vmem>>) attributes {dimension_semantics = [#tpu.dimension_semantics<parallel>], iteration_bounds = array<i64: 2>, scalar_prefetch = 0 : i64, scratch_operands = 0 : i64, tpu.core_type = #tpu.core_type<tc>, window_params = [{transform_indices = @transform_0, window_bounds = array<i64: 1, 4, 16, 16>}, {pipeline_mode = #tpu.pipeline_mode<synchronous>, transform_indices = @transform_1, window_bounds = array<i64: 64, 8>}, {pipeline_mode = #tpu.pipeline_mode<synchronous>, transform_indices = @transform_2, window_bounds = array<i64: 128, 16>}, {pipeline_mode = #tpu.pipeline_mode<synchronous>, transform_indices = @transform_3, window_bounds = array<i64: 4, 4, 16>}, {transform_indices = @transform_4, window_bounds = array<i64: 1, 1, 1>}]} {
    %c0 = arith.constant 0 : index
    %c0_0 = arith.constant 0 : index
    %c0_1 = arith.constant 0 : index
    %c0_2 = arith.constant 0 : index
    %0 = vector.load %arg1[%c0, %c0_0, %c0_1, %c0_2] : memref<1x4x16x16xf32, #tpu.memory_space<vmem>>, vector<1x4x16x16xf32>
    %1 = tpu.transpose %0, [0, 2, 3, 1] : vector<1x4x16x16xf32> -> vector<1x16x16x4xf32>
    %2 = vector.shape_cast %1 : vector<1x16x16x4xf32> to vector<1x8x2x16x4xf32>
    %3 = vector.extract_strided_slice %2 {offsets = [0, 0, 0, 0, 0], sizes = [1, 8, 1, 16, 4], strides = [1, 1, 1, 1, 1]} : vector<1x8x2x16x4xf32> to vector<1x8x1x16x4xf32>
    %4 = vector.shape_cast %3 : vector<1x8x1x16x4xf32> to vector<1x8x16x4xf32>
    %5 = vector.extract_strided_slice %2 {offsets = [0, 0, 1, 0, 0], sizes = [1, 8, 1, 16, 4], strides = [1, 1, 1, 1, 1]} : vector<1x8x2x16x4xf32> to vector<1x8x1x16x4xf32>
    %6 = vector.shape_cast %5 : vector<1x8x1x16x4xf32> to vector<1x8x16x4xf32>
    %cst = arith.constant 0.000000e+00 : f32
    %7 = vector.broadcast %cst : f32 to vector<1x1x16x4xf32>
    %8 = tpu.concatenate %7, %6 in 1 : vector<1x1x16x4xf32>, vector<1x8x16x4xf32> -> vector<1x9x16x4xf32>
    %9 = tpu.concatenate %4, %7 in 1 : vector<1x8x16x4xf32>, vector<1x1x16x4xf32> -> vector<1x9x16x4xf32>
    %10 = vector.shape_cast %8 : vector<1x9x16x4xf32> to vector<1x9x8x2x4xf32>
    %11 = vector.extract_strided_slice %10 {offsets = [0, 0, 0, 0, 0], sizes = [1, 9, 8, 1, 4], strides = [1, 1, 1, 1, 1]} : vector<1x9x8x2x4xf32> to vector<1x9x8x1x4xf32>
    %12 = vector.shape_cast %11 : vector<1x9x8x1x4xf32> to vector<1x9x8x4xf32>
    %13 = vector.extract_strided_slice %10 {offsets = [0, 0, 0, 1, 0], sizes = [1, 9, 8, 1, 4], strides = [1, 1, 1, 1, 1]} : vector<1x9x8x2x4xf32> to vector<1x9x8x1x4xf32>
    %14 = vector.shape_cast %13 : vector<1x9x8x1x4xf32> to vector<1x9x8x4xf32>
    %cst_3 = arith.constant 0.000000e+00 : f32
    %15 = vector.broadcast %cst_3 : f32 to vector<1x9x1x4xf32>
    %16 = tpu.concatenate %15, %14 in 2 : vector<1x9x1x4xf32>, vector<1x9x8x4xf32> -> vector<1x9x9x4xf32>
    %17 = tpu.concatenate %12, %15 in 2 : vector<1x9x8x4xf32>, vector<1x9x1x4xf32> -> vector<1x9x9x4xf32>
    %18 = vector.shape_cast %9 : vector<1x9x16x4xf32> to vector<1x9x8x2x4xf32>
    %19 = vector.extract_strided_slice %18 {offsets = [0, 0, 0, 0, 0], sizes = [1, 9, 8, 1, 4], strides = [1, 1, 1, 1, 1]} : vector<1x9x8x2x4xf32> to vector<1x9x8x1x4xf32>
    %20 = vector.shape_cast %19 : vector<1x9x8x1x4xf32> to vector<1x9x8x4xf32>
    %21 = vector.extract_strided_slice %18 {offsets = [0, 0, 0, 1, 0], sizes = [1, 9, 8, 1, 4], strides = [1, 1, 1, 1, 1]} : vector<1x9x8x2x4xf32> to vector<1x9x8x1x4xf32>
    %22 = vector.shape_cast %21 : vector<1x9x8x1x4xf32> to vector<1x9x8x4xf32>
    %cst_4 = arith.constant 0.000000e+00 : f32
    %23 = vector.broadcast %cst_4 : f32 to vector<1x9x1x4xf32>
    %24 = tpu.concatenate %23, %22 in 2 : vector<1x9x1x4xf32>, vector<1x9x8x4xf32> -> vector<1x9x9x4xf32>
    %25 = tpu.concatenate %20, %23 in 2 : vector<1x9x8x4xf32>, vector<1x9x1x4xf32> -> vector<1x9x9x4xf32>
    %26 = tpu.concatenate %16, %17, %24, %25 in 3 : vector<1x9x9x4xf32>, vector<1x9x9x4xf32>, vector<1x9x9x4xf32>, vector<1x9x9x4xf32> -> vector<1x9x9x16xf32>
    %c0_5 = arith.constant 0 : index
    %c0_6 = arith.constant 0 : index
    %27 = vector.load %arg2[%c0_5, %c0_6] : memref<64x8xbf16, #tpu.memory_space<vmem>>, vector<64x8xbf16>
    %28 = vector.extract_strided_slice %26 {offsets = [0, 0, 0, 0], sizes = [1, 8, 8, 16], strides = [1, 1, 1, 1]} : vector<1x9x9x16xf32> to vector<1x8x8x16xf32>
    %29 = vector.extract_strided_slice %26 {offsets = [0, 0, 1, 0], sizes = [1, 8, 8, 16], strides = [1, 1, 1, 1]} : vector<1x9x9x16xf32> to vector<1x8x8x16xf32>
    %30 = vector.extract_strided_slice %26 {offsets = [0, 1, 0, 0], sizes = [1, 8, 8, 16], strides = [1, 1, 1, 1]} : vector<1x9x9x16xf32> to vector<1x8x8x16xf32>
    %31 = vector.extract_strided_slice %26 {offsets = [0, 1, 1, 0], sizes = [1, 8, 8, 16], strides = [1, 1, 1, 1]} : vector<1x9x9x16xf32> to vector<1x8x8x16xf32>
    %32 = tpu.concatenate %28, %29, %30, %31 in 3 : vector<1x8x8x16xf32>, vector<1x8x8x16xf32>, vector<1x8x8x16xf32>, vector<1x8x8x16xf32> -> vector<1x8x8x64xf32>
    %33 = vector.shape_cast %32 : vector<1x8x8x64xf32> to vector<64x64xf32>
    %34 = arith.truncf %33 : vector<64x64xf32> to vector<64x64xbf16>
    %cst_7 = arith.constant dense<0.000000e+00> : vector<64x8xf32>
    %35 = tpu.matmul %34, %27, %cst_7 {dimension_numbers = #tpu.dot_dimension_numbers<[1], [0], [0], [1], [0, 0, 1, 1], [], []>} : vector<64x64xbf16>, vector<64x8xbf16>, vector<64x8xf32> -> vector<64x8xf32>
    %cst_8 = arith.constant 2.000000e-01 : f32
    %36 = vector.broadcast %cst_8 : f32 to vector<64x8xf32>
    %37 = arith.mulf %36, %35 : vector<64x8xf32>
    %38 = arith.maximumf %35, %37 : vector<64x8xf32>
    %39 = vector.shape_cast %38 : vector<64x8xf32> to vector<1x8x8x8xf32>
    %40 = vector.shape_cast %39 : vector<1x8x8x8xf32> to vector<1x4x2x8x8xf32>
    %41 = vector.extract_strided_slice %40 {offsets = [0, 0, 0, 0, 0], sizes = [1, 4, 1, 8, 8], strides = [1, 1, 1, 1, 1]} : vector<1x4x2x8x8xf32> to vector<1x4x1x8x8xf32>
    %42 = vector.shape_cast %41 : vector<1x4x1x8x8xf32> to vector<1x4x8x8xf32>
    %43 = vector.extract_strided_slice %40 {offsets = [0, 0, 1, 0, 0], sizes = [1, 4, 1, 8, 8], strides = [1, 1, 1, 1, 1]} : vector<1x4x2x8x8xf32> to vector<1x4x1x8x8xf32>
    %44 = vector.shape_cast %43 : vector<1x4x1x8x8xf32> to vector<1x4x8x8xf32>
    %cst_9 = arith.constant 0.000000e+00 : f32
    %45 = vector.broadcast %cst_9 : f32 to vector<1x1x8x8xf32>
    %46 = tpu.concatenate %45, %44 in 1 : vector<1x1x8x8xf32>, vector<1x4x8x8xf32> -> vector<1x5x8x8xf32>
    %47 = tpu.concatenate %42, %45 in 1 : vector<1x4x8x8xf32>, vector<1x1x8x8xf32> -> vector<1x5x8x8xf32>
    %48 = vector.shape_cast %46 : vector<1x5x8x8xf32> to vector<1x5x4x2x8xf32>
    %49 = vector.extract_strided_slice %48 {offsets = [0, 0, 0, 0, 0], sizes = [1, 5, 4, 1, 8], strides = [1, 1, 1, 1, 1]} : vector<1x5x4x2x8xf32> to vector<1x5x4x1x8xf32>
    %50 = vector.shape_cast %49 : vector<1x5x4x1x8xf32> to vector<1x5x4x8xf32>
    %51 = vector.extract_strided_slice %48 {offsets = [0, 0, 0, 1, 0], sizes = [1, 5, 4, 1, 8], strides = [1, 1, 1, 1, 1]} : vector<1x5x4x2x8xf32> to vector<1x5x4x1x8xf32>
    %52 = vector.shape_cast %51 : vector<1x5x4x1x8xf32> to vector<1x5x4x8xf32>
    %cst_10 = arith.constant 0.000000e+00 : f32
    %53 = vector.broadcast %cst_10 : f32 to vector<1x5x1x8xf32>
    %54 = tpu.concatenate %53, %52 in 2 : vector<1x5x1x8xf32>, vector<1x5x4x8xf32> -> vector<1x5x5x8xf32>
    %55 = tpu.concatenate %50, %53 in 2 : vector<1x5x4x8xf32>, vector<1x5x1x8xf32> -> vector<1x5x5x8xf32>
    %56 = vector.shape_cast %47 : vector<1x5x8x8xf32> to vector<1x5x4x2x8xf32>
    %57 = vector.extract_strided_slice %56 {offsets = [0, 0, 0, 0, 0], sizes = [1, 5, 4, 1, 8], strides = [1, 1, 1, 1, 1]} : vector<1x5x4x2x8xf32> to vector<1x5x4x1x8xf32>
    %58 = vector.shape_cast %57 : vector<1x5x4x1x8xf32> to vector<1x5x4x8xf32>
    %59 = vector.extract_strided_slice %56 {offsets = [0, 0, 0, 1, 0], sizes = [1, 5, 4, 1, 8], strides = [1, 1, 1, 1, 1]} : vector<1x5x4x2x8xf32> to vector<1x5x4x1x8xf32>
    %60 = vector.shape_cast %59 : vector<1x5x4x1x8xf32> to vector<1x5x4x8xf32>
    %cst_11 = arith.constant 0.000000e+00 : f32
    %61 = vector.broadcast %cst_11 : f32 to vector<1x5x1x8xf32>
    %62 = tpu.concatenate %61, %60 in 2 : vector<1x5x1x8xf32>, vector<1x5x4x8xf32> -> vector<1x5x5x8xf32>
    %63 = tpu.concatenate %58, %61 in 2 : vector<1x5x4x8xf32>, vector<1x5x1x8xf32> -> vector<1x5x5x8xf32>
    %64 = tpu.concatenate %54, %55, %62, %63 in 3 : vector<1x5x5x8xf32>, vector<1x5x5x8xf32>, vector<1x5x5x8xf32>, vector<1x5x5x8xf32> -> vector<1x5x5x32xf32>
    %c0_12 = arith.constant 0 : index
    %c0_13 = arith.constant 0 : index
    %65 = vector.load %arg3[%c0_12, %c0_13] : memref<128x16xbf16, #tpu.memory_space<vmem>>, vector<128x16xbf16>
    %66 = vector.extract_strided_slice %64 {offsets = [0, 0, 0, 0], sizes = [1, 4, 4, 32], strides = [1, 1, 1, 1]} : vector<1x5x5x32xf32> to vector<1x4x4x32xf32>
    %67 = vector.extract_strided_slice %64 {offsets = [0, 0, 1, 0], sizes = [1, 4, 4, 32], strides = [1, 1, 1, 1]} : vector<1x5x5x32xf32> to vector<1x4x4x32xf32>
    %68 = vector.extract_strided_slice %64 {offsets = [0, 1, 0, 0], sizes = [1, 4, 4, 32], strides = [1, 1, 1, 1]} : vector<1x5x5x32xf32> to vector<1x4x4x32xf32>
    %69 = vector.extract_strided_slice %64 {offsets = [0, 1, 1, 0], sizes = [1, 4, 4, 32], strides = [1, 1, 1, 1]} : vector<1x5x5x32xf32> to vector<1x4x4x32xf32>
    %70 = tpu.concatenate %66, %67, %68, %69 in 3 : vector<1x4x4x32xf32>, vector<1x4x4x32xf32>, vector<1x4x4x32xf32>, vector<1x4x4x32xf32> -> vector<1x4x4x128xf32>
    %71 = vector.shape_cast %70 : vector<1x4x4x128xf32> to vector<16x128xf32>
    %72 = arith.truncf %71 : vector<16x128xf32> to vector<16x128xbf16>
    %cst_14 = arith.constant dense<0.000000e+00> : vector<16x16xf32>
    %73 = tpu.matmul %72, %65, %cst_14 {dimension_numbers = #tpu.dot_dimension_numbers<[1], [0], [0], [1], [0, 0, 1, 1], [], []>} : vector<16x128xbf16>, vector<128x16xbf16>, vector<16x16xf32> -> vector<16x16xf32>
    %cst_15 = arith.constant 2.000000e-01 : f32
    %74 = vector.broadcast %cst_15 : f32 to vector<16x16xf32>
    %75 = arith.mulf %74, %73 : vector<16x16xf32>
    %76 = arith.maximumf %73, %75 : vector<16x16xf32>
    %77 = vector.shape_cast %76 : vector<16x16xf32> to vector<1x4x4x16xf32>
    %c0_16 = arith.constant 0 : index
    %c0_17 = arith.constant 0 : index
    %c0_18 = arith.constant 0 : index
    %78 = vector.load %arg4[%c0_16, %c0_17, %c0_18] : memref<4x4x16xf32, #tpu.memory_space<vmem>>, vector<4x4x16xf32>
    %79 = vector.shape_cast %78 : vector<4x4x16xf32> to vector<1x4x4x16xf32>
    %80 = arith.mulf %77, %79 : vector<1x4x4x16xf32>
    %81 = vector.shape_cast %80 : vector<1x4x4x16xf32> to vector<1x1x4x4x16xf32>
    %cst_19 = arith.constant dense<0.000000e+00> : vector<1xf32>
    %82 = vector.multi_reduction <add>, %81, %cst_19 [1, 2, 3, 4] : vector<1x1x4x4x16xf32> to vector<1xf32>
    %83 = vector.shape_cast %82 : vector<1xf32> to vector<1x1x1x1x1xf32>
    %84 = vector.extract %83[0, 0, 0, 0, 0] : f32 from vector<1x1x1x1x1xf32>
    %85 = vector.broadcast %84 : f32 to vector<1x1x1xf32>
    %c0_20 = arith.constant 0 : index
    %c0_21 = arith.constant 0 : index
    %c0_22 = arith.constant 0 : index
    %86 = vector.load %arg5[%c0_20, %c0_21, %c0_22] : memref<1x1x1xf32, #tpu.memory_space<vmem>>, vector<1x1x1xf32>
    tpu.vector_store %arg5[%c0_20, %c0_21, %c0_22], %85 {strides = array<i32>} : memref<1x1x1xf32, #tpu.memory_space<vmem>>, vector<1x1x1xf32>,
    return
  }
  func.func @transform_0(%arg0: i32) -> (i32, i32, i32, i32) {
    %c0_i32 = arith.constant 0 : i32
    %c0_i32_0 = arith.constant 0 : i32
    %c0_i32_1 = arith.constant 0 : i32
    %c0_i32_2 = arith.constant 0 : i32
    return %arg0, %c0_i32, %c0_i32_0, %c0_i32_1 : i32, i32, i32, i32
  }
  func.func @transform_1(%arg0: i32) -> (i32, i32) {
    %c0_i32 = arith.constant 0 : i32
    %c0_i32_0 = arith.constant 0 : i32
    %c0_i32_1 = arith.constant 0 : i32
    return %c0_i32, %c0_i32_0 : i32, i32
  }
  func.func @transform_2(%arg0: i32) -> (i32, i32) {
    %c0_i32 = arith.constant 0 : i32
    %c0_i32_0 = arith.constant 0 : i32
    %c0_i32_1 = arith.constant 0 : i32
    return %c0_i32, %c0_i32_0 : i32, i32
  }
  func.func @transform_3(%arg0: i32) -> (i32, i32, i32) {
    %c0_i32 = arith.constant 0 : i32
    %c0_i32_0 = arith.constant 0 : i32
    %c0_i32_1 = arith.constant 0 : i32
    %c0_i32_2 = arith.constant 0 : i32
    return %c0_i32, %c0_i32_0, %c0_i32_1 : i32, i32, i32
  }
  func.func @transform_4(%arg0: i32) -> (i32, i32, i32) {
    %c0_i32 = arith.constant 0 : i32
    %c0_i32_0 = arith.constant 0 : i32
    %c0_i32_1 = arith.constant 0 : i32
    return %arg0, %c0_i32, %c0_i32_0 : i32, i32, i32
  }
}

</mosaic_0001>

<bundles_post_ra>
// kernel: forward.1
= control target key start
LH: loop header
LB: loop body
LE: loop exit
PB: predicated region body
PF: predicated region fallthrough
CT: control target
= control target key end

     0   :  { %9 = vsyncpa [#allocation3], 0  ;;  %s5306_s0 = inlined_call_operand.hbm [shape: f32[2,4,16,16], index: 0, kind: input, shape index: {}]   ;;  %s5307_s1 = inlined_call_operand.vmem [shape: bf16[64,8], index: 1, kind: input, shape index: {}]   ;;  %s5308_s2 = inlined_call_operand.vmem [shape: bf16[128,16], index: 2, kind: input, shape index: {}]   ;;  %s5309_s3 = inlined_call_operand.vmem [shape: f32[4,4,16], index: 3, kind: input, shape index: {}]   ;;  %s5310_s4 = inlined_call_operand.vmem [shape: f32[2,1,1], index: 4, kind: output, shape index: {}]  }
   0x1   :  { %11 = vsyncpa [#allocation3 + $0x1], 0  ;;  %s3541_s15 = smov 0   ;;  %s3543_s16 = smov 0  }
   0x2   :  { %s3545_s17 = smov 0   ;;  %s3547_s18 = smov 0  }
   0x3 LB: > { %s3560_s19 = sadd.s32 4294967295, %s3500_s18   ;;  %s3563_s20 = sadd.s32 1, %s3500_s18   ;;  %s3500_s18 = sphi %s3547_s18, %s5473_s18   ;;  %s3496_s17 = sphi %s3545_s17, %s5472_s17   ;;  %s3492_s16 = sphi %s3543_s16, %s5471_s16   ;;  %s3488_s15 = sphi %s3541_s15, %s5470_s15  }
   0x4   : > { %s21_s21 = ssub.s32 %s3500_s18, %s3563_s20  ;;  %s24_s22 = sadd.s32 1, %s3496_s17 }
   0x5   : > { %p22_p0 = scmp.eq.s32.totalorder %s21_s21, 0  ;;  %p31_p1 = scmp.ne.s32.totalorder %s3496_s17, %s3492_s16 }
   0x6   : > { %p32_p2 = scmp.eq.s32.totalorder %s3500_s18, 0  ;;  %p37_p3 = scmp.ne.s32.totalorder %s3492_s16, %s3488_s15 }
   0x7   : > { %s3573_s23 = scalar_select %p22_p0, %s3496_s17, %s24_s22  }
   0x8   : > { %p3575_p4 = por %p32_p2, %p31_p1  ;;  %p38_p5 = scmp.eq.s32.totalorder %s3560_s19, 0 }
   0x9   : > { %p3110_p6 = scmp.lt.s32.totalorder %s3500_s18, 2  ;;  %s159_s26 = sand.u32 1, %s3496_s17  }
   0xa   : > { %p3581_p7 = por %p38_p5, %p37_p3  ;;  %s3022_s27 = sshll.u32 %s159_s26, 6 }
   0xb   : > { %s3081_s28 = sshll.u32 %s3500_s18, 6  ;;  %s163_s6 = scalar_lea.vmem [#allocation2], %s3022_s27 }
   0xc   : > { %s168_s5 = scalar_lea.hbm %s5306_s0, %s3081_s28  ;;  %s171_s7 = sshll.u32 %s163_s6, 4  ;;  %s172_s7 = int_to_ptr.vmem [resolvable:$true] %s171_s7 }
   0xd   : > { %s169_s8 = sshll.u32 %s168_s5, 4  ;;  %p3592_p8 = pnand %p3110_p6, %p3575_p4  ;;  %s170_s8 = int_to_ptr.hbm [resolvable:$true] %s169_s8 }
   0xe   : > { %p3025_p9 = scmp.ge.s32.totalorder %s3500_s18, 1  ;;  %s160_s10 = scalar_lea.sflag [#allocation3], %s159_s26 }
   0xf   : > { %s3436_s11 = sshra.s32 %s170_s8, 4  ;;  %p3440_p11 = pneg %p3592_p8  ;;  %s3437_s11 = int_to_ptr.hbm [resolvable:$true] %s3436_s11 }
  0x10   : > { %s3438_s12 = scalar_lea.hbm %s3437_s11, 64  ;;  %s3443_s15 = scalar_lea.hbm %s5306_s0, 128 }
  0x11   : > { %p3439_p10 = scmp.ne.s32.totalorder %s3437_s11, %s3438_s12  ;;  %p3444_p0 = scmp.lt.s32.totalorder %s3437_s11, %s5306_s0 }
  0x12   : > { %p3445_p1 = scmp.lt.s32.totalorder %s3443_s15, %s3438_s12 }
  0x13   : > { %p3441_p12 = pnand %p3440_p11, %p3439_p10 }
  0x14   : > { %p3446_p2 = por %p3445_p1, %p3444_p0 }
  0x15   : > { %p3442_p13 = pneg %p3441_p12 }
  0x17   : > { %p3447_p3 = pnand %p3446_p2, %p3442_p13 }
  0x19   : > { %3450 = shalt.err (!%p3447_p3)
}
  0x1a   : > { %s3502_s24 = smov 128   ;;  %s3503_s26 = smov 8  }
  0x1b   : > { %3109 = dma.hbm_to_vmem [thread:$0]  (!%p3592_p8), %s170_s8, 1024, %s172_s7, %s160_s10, %s3502_s24, %s3502_s24, %s3503_s26  }
  0x1c   : > { %p179_p4 = scmp.lt.s32.totalorder %s3500_s18, 3 }
  0x1e   : > { %p180_p5 = pnand %p3025_p9, %p179_p4 }
  0x20   : > { %183 = sbr.rel (%p180_p5) target bundleno = 1594 (0x63a), region = 36 }
  0x25   : > { %s185_s27 = sand.u32 1, %s3492_s16  }
  0x26   : > { %s3026_s28 = sshll.u32 %s185_s27, 6  ;;  %s186_s29 = scalar_lea.sflag [#allocation3], %s185_s27 }
  0x27   : > { %s189_s30 = scalar_lea.vmem [#allocation2], %s3026_s28 }
  0x28   : > { %3483 = dma.done.wait (%p3581_p7), %s186_s29, 1024  }
  0x29   : > { %3485 = vsyncadd (%p3581_p7), %s186_s29, 4294966272  ;;  %v219_v0 = vld [vmem:[%s189_s30 + $0x10] sm:$0xff]  ;;  %v221_v1 = vld [vmem:[%s189_s30 + $0x20] sm:$0xff]  ;;  %v3504_v12 = vmov 1983009808   ;;  %vm354_vm0 = vcmask 1047556  }
  0x2a   : > { %v217_v2 = vld [vmem:[%s189_s30] sm:$0xff]  ;;  %v3171_v3 = vpack.i.bf16 %v221_v1, %v219_v0  ;;  %v223_v4 = vld [vmem:[%s189_s30 + $0x30] sm:$0xff]  ;;  %v220_v6 = vld [vmem:[%s189_s30 + $0x18] sm:$0xff]  ;;  %v359_v13 = vunpack.c.l.s4 %v3504_v12  ;;  %v3505_v25 = vmov 1934713408   ;;  %vm1562_vm1 = vcmask 1042434  }
  0x2b   : > { %v3157_v5 = vpack.i.bf16 %v223_v4, %v217_v2  ;;  %v222_v7 = vld [vmem:[%s189_s30 + $0x28] sm:$0xff]  ;;  %v224_v9 = vld [vmem:[%s189_s30 + $0x38] sm:$0xff]  ;;  %v383_v26 = vunpack.c.l.s4 %v3505_v25  ;;  %vm1564_vm2 = vcmask 1043459   ;;  %vm1566_vm3 = vcmask 1044484   ;;  %s3506_s18 = smov 8   ;;  %s3507_s25 = smov 4  }
  0x2c   : > { %3172 = vxpose.xlu1.b32.start [1/2] (short) (narrow) %v3171_v3, 16  ;;  %v218_v8 = vld [vmem:[%s189_s30 + $0x8] sm:$0xff]  ;;  %v3173_v10 = vpack.i.bf16 %v222_v7, %v220_v6  ;;  %v3615_v15 = vunpack.c.0.s8 %v359_v13  ;;  %vm1568_vm4 = vcmask 1045509   ;;  %vm1570_vm5 = vcmask 1046534   ;;  %s3509_s5 = smov 12   ;;  %s3510_s6 = smov 16  }
  0x2d   : > { %3158 = vxpose.xlu0.b32.start [1/2] (short) (narrow) %v3157_v5, 16  ;;  %v3159_v11 = vpack.i.bf16 %v224_v9, %v218_v8  ;;  %v3625_v37 = vunpack.c.0.s8 %v383_v26  ;;  %vm1572_vm6 = vcmask 1047559   ;;  %vm1640_vm7 = vcmask 1040384   ;;  %s3511_s7 = smov 32   ;;  %s3512_s8 = smov 48  }
  0x2e   : > { %vm1718_vm8 = vcmask 1041409   ;;  %vm2217_vm9 = vcmask 31744   ;;  %vm2236_vm10 = vcmask 64512   ;;  %vm2255_vm11 = vcmask 97280   ;;  %s3513_s22 = smov 24   ;;  %s3514_s24 = smov 64  }
  0x2f   : > { %vm2298_vm12 = vcmask 1046528   ;;  %vm2400_vm13 = vcmask 130048   ;;  %vm2409_vm14 = vcmask 261120   ;;  %vm2418_vm15 = vcmask 392192   ;;  %s3515_s26 = smov 96   ;;  %p213_p6 = scmp.lt.s32.totalorder %s3560_s19, 1 }
  0x31   : > { %s5475_s19 = smov (!%p213_p6, %s3560_s19), 1 }
  0x34   : > { %3174 = vxpose.xlu1.b32.end [2/2] (short) (narrow) %v3173_v10, 16 }
  0x35   : > { %3160 = vxpose.xlu0.b32.end [2/2] (short) (narrow) %v3159_v11, 16 }
  0xd0   : > { %v3175_v14 = vpop.trf.xlu1 }
  0xd1   : > { %v3179_v16 = vunpack.i.h.bf16 %v3175_v14  ;;  %v3176_v17 = vunpack.i.l.bf16 %v3175_v14  ;;  %v3161_v18 = vpop.trf.xlu0 }
  0xd2   : > { %v3165_v19 = vunpack.i.h.bf16 %v3161_v18  ;;  %v3162_v20 = vunpack.i.l.bf16 %v3161_v18 }
  0xd3   : > { %v353_v21 = vrot.slane %v3179_v16, 4  ;;  %v368_v22 = vrot.slane %v3176_v17, 4 }
  0xd4   : > { %v366_v23 = vrot.slane %v3165_v19, 4  ;;  %v356_v24 = vrot.slane %v3162_v20, 4 }
  0xd5   : > { %v355_v27 = vsel %vm354_vm0, %v353_v21, %v3162_v20  ;;  %v369_v28 = vsel %vm354_vm0, %v3165_v19, %v368_v22 }
  0xd6   : > { %v367_v29 = vsel %vm354_vm0, %v366_v23, %v3176_v17  ;;  %v361_v30 = vperm.slane %v355_v27, %v3615_v15  ;;  %v357_v31 = vsel %vm354_vm0, %v3179_v16, %v356_v24  ;;  %v377_v32 = vperm.slane %v369_v28, %v3615_v15 }
  0xd7   : > { %v365_v33 = vperm.slane %v357_v31, %v3615_v15  ;;  %v373_v35 = vperm.slane %v367_v29, %v3615_v15 }
  0xd8   : > { %v3180_v34 = vpop.trf.xlu1  ;;  %v380_v36 = vrot.slane %v361_v30, 4  ;;  %v390_v38 = vrot.slane %v377_v32, 4 }
  0xd9   : > { %v3184_v39 = vunpack.i.h.bf16 %v3180_v34  ;;  %v3181_v40 = vunpack.i.l.bf16 %v3180_v34  ;;  %v3166_v41 = vpop.trf.xlu0  ;;  %v392_v47 = vrot.slane %v365_v33, 4  ;;  %v378_v51 = vrot.slane %v373_v35, 4 }
  0xda   : > { %v3170_v42 = vunpack.i.h.bf16 %v3166_v41  ;;  %v3167_v43 = vunpack.i.l.bf16 %v3166_v41  ;;  %v381_v46 = vsel %vm354_vm0, %v373_v35, %v380_v36  ;;  %v391_v53 = vsel %vm354_vm0, %v390_v38, %v365_v33 }
  0xdb   : > { %v410_v44 = vrot.slane %v3184_v39, 4  ;;  %v424_v45 = vrot.slane %v3181_v40, 4  ;;  %v389_v50 = vperm.slane %v381_v46, %v3625_v37  ;;  %v393_v52 = vsel %vm354_vm0, %v377_v32, %v392_v47 }
  0xdc   : > { %v422_v48 = vrot.slane %v3170_v42, 4  ;;  %v412_v49 = vrot.slane %v3167_v43, 4  ;;  %v379_v56 = vsel %vm354_vm0, %v378_v51, %v361_v30  ;;  %v397_v57 = vperm.slane %v391_v53, %v3625_v37 }
  0xdd   : > { %v425_v54 = vsel %vm354_vm0, %v3170_v42, %v424_v45  ;;  %v404_v55 = vrot.slane %v389_v50, 4  ;;  %v411_v58 = vsel %vm354_vm0, %v410_v44, %v3167_v43  ;;  %v401_v59 = vperm.slane %v393_v52, %v3625_v37 }
  0xde   : > { %v385_v60 = vperm.slane %v379_v56, %v3625_v37  ;;  %v413_v61 = vsel %vm354_vm0, %v3184_v39, %v412_v49  ;;  %v406_v63 = vrot.slane %v397_v57, 4  ;;  %v423_v1 = vsel %vm354_vm0, %v422_v48, %v3181_v40 }
  0xdf   : > { %v405_v62 = vsel %vm354_vm0, 0.0, %v404_v55  ;;  %v421_v0 = vperm.slane %v413_v61, %v3615_v15  ;;  %v429_v4 = vperm.slane %v423_v1, %v3615_v15  ;;  %v433_v6 = vperm.slane %v425_v54, %v3615_v15 }
  0xe0   : > { %v3221_v2 = vpack.i.bf16 %v401_v59, %v405_v62  ;;  %v402_v3 = vrot.slane %v385_v60, 4  ;;  %v407_v5 = vsel %vm354_vm0, 0.0, %v406_v63  ;;  %v417_v10 = vperm.slane %v411_v58, %v3615_v15 }
  0xe1   : > { %v448_v7 = vrot.slane %v421_v0, 4  ;;  %v3209_v8 = vpack.i.bf16 %v385_v60, %v407_v5  ;;  %v434_v11 = vrot.slane %v429_v4, 4  ;;  %v446_v17 = vrot.slane %v433_v6, 4 }
  0xe2   : > { %3222 = vxpose.xlu1.b32.start.end [1/1] (short) (narrow) %v3221_v2, 16  ;;  %v403_v9 = vsel %vm354_vm0, 0.0, %v402_v3  ;;  %v436_v20 = vrot.slane %v417_v10, 4  ;;  %v408_v23 = vrot.slane %v401_v59, 4 }
  0xe3   : > { %v3185_v12 = vpack.i.bf16 %v389_v50, %v403_v9  ;;  %v449_v13 = vsel %vm354_vm0, %v433_v6, %v448_v7  ;;  %3210 = vxpose.xlu0.b32.start.end [1/1] (short) (narrow) %v3209_v8, 16  ;;  %v435_v14 = vsel %vm354_vm0, %v434_v11, %v417_v10  ;;  %v447_v21 = vsel %vm354_vm0, %v446_v17, %v421_v0 }
  0xe4   : > { %v457_v16 = vperm.slane %v449_v13, %v3625_v37  ;;  %v441_v18 = vperm.slane %v435_v14, %v3625_v37  ;;  %v437_v25 = vsel %vm354_vm0, %v429_v4, %v436_v20  ;;  %v453_v26 = vperm.slane %v447_v21, %v3625_v37 }
  0xe5   : > { %3186 = vxpose.xlu2.b32.start.end [1/1] (short) (narrow) %v3185_v12, 16  ;;  %v445_v29 = vperm.slane %v437_v25, %v3625_v37  ;;  %v409_v30 = vsel %vm354_vm0, 0.0, %v408_v23 }
  0xe6   : > { %v464_v19 = vrot.slane %v457_v16, 4  ;;  %v458_v22 = vrot.slane %v441_v18, 4  ;;  %v3197_v32 = vpack.i.bf16 %v397_v57, %v409_v30  ;;  %v462_v34 = vrot.slane %v453_v26, 4 }
  0xe7   : > { %v460_v33 = vrot.slane %v445_v29, 4 }
  0xe8   : > { %v465_v24 = vsel %vm354_vm0, 0.0, %v464_v19  ;;  %v459_v27 = vsel %vm354_vm0, 0.0, %v458_v22  ;;  %v463_v36 = vsel %vm354_vm0, 0.0, %v462_v34 }
  0xe9   : > { %v3245_v28 = vpack.i.bf16 %v453_v26, %v465_v24  ;;  %v3233_v31 = vpack.i.bf16 %v445_v29, %v459_v27  ;;  %v461_v35 = vsel %vm354_vm0, 0.0, %v460_v33  ;;  %v3257_v39 = vpack.i.bf16 %v441_v18, %v463_v36 }
  0xea   : > { %v3269_v38 = vpack.i.bf16 %v457_v16, %v461_v35 }
  0xf2   : > { %3246 = vxpose.xlu1.b32.start.end [1/1] (short) (narrow) %v3245_v28, 16 }
  0xf3   : > { %3234 = vxpose.xlu0.b32.start.end [1/1] (short) (narrow) %v3233_v31, 16 }
  0xf5   : > { %3198 = vxpose.xlu2.b32.start.end [1/1] (short) (narrow) %v3197_v32, 16 }
 0x103   : > { %3270 = vxpose.xlu0.b32.start.end [1/1] (short) (narrow) %v3269_v38, 16 }
 0x105   : > { %3258 = vxpose.xlu2.b32.start.end [1/1] (short) (narrow) %v3257_v39, 16 }
 0x17e   : > { %v3187_v40 = vpop.trf.xlu2 }
 0x17f   : > { %v3188_v41 = vunpack.i.l.bf16 %v3187_v40  ;;  %v3191_v42 = vunpack.i.h.bf16 %v3187_v40 }
 0x181   : > { %v992_v43 = vrot.slane %v3188_v41, 4  ;;  %v978_v46 = vrot.slane %v3191_v42, 4 }
 0x186   : > { %v3659_v44 = vpop.trf.xlu2  ;;  %v3223_v45 = vpop.trf.xlu1 }
 0x187   : > { %v3224_v47 = vunpack.i.l.bf16 %v3223_v45  ;;  %v3211_v48 = vpop.trf.xlu0  ;;  %v3227_v49 = vunpack.i.h.bf16 %v3223_v45  ;;  %v3196_v57 = vunpack.i.h.bf16 %v3659_v44  ;;  %v3193_v0 = vunpack.i.l.bf16 %v3659_v44 }
 0x188   : > { %v3215_v50 = vunpack.i.h.bf16 %v3211_v48  ;;  %v3212_v55 = vunpack.i.l.bf16 %v3211_v48 }
 0x189   : > { %v990_v51 = vrot.slane %v3224_v47, 4  ;;  %v993_v52 = vsel %vm354_vm0, %v3224_v47, %v992_v43  ;;  %v1002_v60 = vrot.slane %v3227_v49, 4  ;;  %v1202_v20 = vrot.slane %v3196_v57, 4 }
 0x18a   : > { %v1001_v53 = vperm.slane %v993_v52, %v3615_v15  ;;  %v980_v54 = vrot.slane %v3215_v50, 4  ;;  %v979_v56 = vsel %vm354_vm0, %v978_v46, %v3215_v50  ;;  %v1016_v2 = vrot.slane %v3212_v55, 4 }
 0x18b   : > { %v991_v58 = vsel %vm354_vm0, %v990_v51, %v3188_v41  ;;  %v985_v59 = vperm.slane %v979_v56, %v3615_v15  ;;  %v1216_v21 = vrot.slane %v3193_v0, 4 }
 0x18c   : > { %v997_v61 = vperm.slane %v991_v58, %v3615_v15  ;;  %v1038_v62 = vrot.slane %v1001_v53, 4  ;;  %v981_v63 = vsel %vm354_vm0, %v3191_v42, %v980_v54 }
 0x18d   : > { %v989_v1 = vperm.slane %v981_v63, %v3615_v15  ;;  %v1028_v3 = vrot.slane %v985_v59, 4 }
 0x18e   : > { %v3199_v4 = vpop.trf.xlu2  ;;  %v1026_v5 = vrot.slane %v997_v61, 4  ;;  %v3228_v28 = vpop.trf.xlu1 }
 0x18f   : > { %v3203_v6 = vunpack.i.h.bf16 %v3199_v4  ;;  %v1029_v7 = vsel %vm354_vm0, %v997_v61, %v1028_v3  ;;  %v1039_v8 = vsel %vm354_vm0, %v1038_v62, %v989_v1  ;;  %v1040_v9 = vrot.slane %v989_v1, 4  ;;  %v3693_v33 = vpop.trf.xlu0 }
 0x190   : > { %v3200_v10 = vunpack.i.l.bf16 %v3199_v4  ;;  %v1027_v11 = vsel %vm354_vm0, %v1026_v5, %v985_v59  ;;  %v1037_v12 = vperm.slane %v1029_v7, %v3625_v37  ;;  %v3676_v13 = vperm.slane %v1039_v8, %v3625_v37 }
 0x191   : > { %v1003_v14 = vsel %vm354_vm0, %v1002_v60, %v3203_v6  ;;  %v1033_v16 = vperm.slane %v1027_v11, %v3625_v37  ;;  %v1041_v17 = vsel %vm354_vm0, %v1001_v53, %v1040_v9  ;;  %v1004_v18 = vrot.slane %v3203_v6, 4 }
 0x192   : > { %v1009_v19 = vperm.slane %v1003_v14, %v3615_v15  ;;  %v3685_v22 = vperm.slane %v1041_v17, %v3625_v37  ;;  %v1014_v23 = vrot.slane %v3200_v10, 4  ;;  %v1080_v24 = vrot.slane %v1037_v12, 4 }
 0x193   : > { %v1005_v25 = vsel %vm354_vm0, %v3227_v49, %v1004_v18  ;;  %v1017_v27 = vsel %vm354_vm0, %v3200_v10, %v1016_v2  ;;  %v1084_v29 = vrot.slane %v3676_v13, 4  ;;  %v1076_v34 = vrot.slane %v1033_v16, 4 }
 0x194   : > { %v1052_v26 = vrot.slane %v1009_v19, 4  ;;  %v1013_v30 = vperm.slane %v1005_v25, %v3615_v15  ;;  %v1015_v31 = vsel %vm354_vm0, %v1014_v23, %v3212_v55  ;;  %v1025_v32 = vperm.slane %v1017_v27, %v3615_v15 }
 0x195   : > { %v1021_v35 = vperm.slane %v1015_v31, %v3615_v15  ;;  %v3232_v39 = vunpack.i.h.bf16 %v3228_v28  ;;  %v3229_v40 = vunpack.i.l.bf16 %v3228_v28  ;;  %v3220_v43 = vunpack.i.h.bf16 %v3693_v33 }
 0x196   : > { %v1064_v36 = vrot.slane %v1013_v30, 4  ;;  %v1062_v38 = vrot.slane %v1025_v32, 4  ;;  %v1088_v53 = vrot.slane %v3685_v22, 4  ;;  %v3204_v62 = vpop.trf.xlu2  ;;  %v3217_v9 = vunpack.i.l.bf16 %v3693_v33 }
 0x197   : > { %v1050_v41 = vrot.slane %v1021_v35, 4  ;;  %v1053_v42 = vsel %vm354_vm0, %v1021_v35, %v1052_v26  ;;  %v1214_v48 = vrot.slane %v3229_v40, 4  ;;  %v1217_v52 = vsel %vm354_vm0, %v3229_v40, %v1216_v21  ;;  %v3739_v21 = vpop.trf.xlu0 }
 0x198   : > { %v1061_v45 = vperm.slane %v1053_v42, %v3625_v37  ;;  %v1063_v46 = vsel %vm354_vm0, %v1062_v38, %v1013_v30  ;;  %v1065_v47 = vsel %vm354_vm0, %v1025_v32, %v1064_v36  ;;  %v1226_v61 = vrot.slane %v3232_v39, 4 }
 0x199   : > { %v1051_v49 = vsel %vm354_vm0, %v1050_v41, %v1009_v19  ;;  %v1069_v50 = vperm.slane %v1063_v46, %v3625_v37  ;;  %v3704_v51 = vperm.slane %v1065_v47, %v3625_v37  ;;  %v1215_v56 = vsel %vm354_vm0, %v1214_v48, %v3193_v0 }
 0x19a   : > { %v1057_v54 = vperm.slane %v1051_v49, %v3625_v37  ;;  %v1078_v55 = vrot.slane %v1061_v45, 4  ;;  %v3711_v58 = vsel %vm354_vm0, %v1061_v45, %v1080_v24  ;;  %v1221_v3 = vperm.slane %v1215_v56, %v3615_v15 }
 0x19b   : > { %5391 = vst [vmem:[#allocation5_spill] sm:$0xff] %v3711_v58  ;;  %v1082_v59 = vrot.slane %v1069_v50, 4  ;;  %v3714_v60 = vsel %vm354_vm0, %v1069_v50, %v1084_v29  ;;  %v1086_v2 = vrot.slane %v3704_v51, 4  ;;  %v3726_v0 = vsel %vm354_vm0, %v3704_v51, %v1088_v53 }
 0x19c   : > { %v1074_v63 = vrot.slane %v1057_v54, 4  ;;  %v3717_v1 = vsel %vm354_vm0, %v1057_v54, %v1076_v34  ;;  %v3722_v4 = vsel %vm354_vm0, %v1078_v55, %v1037_v12  ;;  %5392 = vst [vmem:[#allocation6_spill] sm:$0xff] %v3726_v0  ;;  %v1225_v5 = vperm.slane %v1217_v52, %v3615_v15 }
 0x19d   : > { %v1204_v6 = vrot.slane %v3220_v43, 4  ;;  %v1250_v8 = vrot.slane %v1221_v3, 4  ;;  %v1203_v11 = vsel %vm354_vm0, %v1202_v20, %v3220_v43  ;;  %v3208_v14 = vunpack.i.h.bf16 %v3204_v62 }
 0x19e   : > { %v3730_v7 = vsel %vm354_vm0, %v1074_v63, %v1033_v16  ;;  %v1262_v10 = vrot.slane %v1225_v5, 4  ;;  %v1209_v17 = vperm.slane %v1203_v11, %v3615_v15  ;;  %v1240_v19 = vrot.slane %v3217_v9, 4  ;;  %v3757_v40 = vpop.trf.xlu2 }
 0x19f   : > { %v1205_v12 = vsel %vm354_vm0, %v3196_v57, %v1204_v6  ;;  %v1227_v16 = vsel %vm354_vm0, %v1226_v61, %v3208_v14  ;;  %v1228_v23 = vrot.slane %v3208_v14, 4  ;;  %v3205_v24 = vunpack.i.l.bf16 %v3204_v62  ;;  %v3769_v62 = vpop.trf.xlu0 }
 0x1a0   : > { %v1213_v18 = vperm.slane %v1205_v12, %v3615_v15  ;;  %v1251_v25 = vsel %vm354_vm0, %v1250_v8, %v1209_v17  ;;  %v1252_v26 = vrot.slane %v1209_v17, 4  ;;  %v1233_v29 = vperm.slane %v1227_v16, %v3615_v15 }
 0x1a1   : > { %v1257_v57 = vperm.slane %v1251_v25, %v3625_v37  ;;  %v1229_v28 = vsel %vm354_vm0, %v3232_v39, %v1228_v23  ;;  %v1238_v33 = vrot.slane %v3205_v24, 4  ;;  %v3753_v34 = vsel %vm354_vm0, %v1082_v59, %v3676_v13 }
 0x1a2   : > { %v1263_v20 = vsel %vm354_vm0, %v1262_v10, %v1213_v18  ;;  %v1264_v44 = vrot.slane %v1213_v18, 4  ;;  %v1253_v30 = vsel %vm354_vm0, %v1221_v3, %v1252_v26  ;;  %v1237_v32 = vperm.slane %v1229_v28, %v3615_v15 }
 0x1a3   : > { %v1269_v27 = vperm.slane %v1263_v20, %v3625_v37  ;;  %v1261_v35 = vperm.slane %v1253_v30, %v3625_v37  ;;  %v1300_v38 = vrot.slane %v1257_v57, 4  ;;  %v1276_v39 = vrot.slane %v1233_v29, 4 }
 0x1a4   : > { %v1265_v31 = vsel %vm354_vm0, %v1225_v5, %v1264_v44  ;;  %v1288_v41 = vrot.slane %v1237_v32, 4  ;;  %v1239_v42 = vsel %vm354_vm0, %v1238_v33, %v3217_v9  ;;  %v1241_v43 = vsel %vm354_vm0, %v3205_v24, %v1240_v19  ;;  %v3247_v24 = vpop.trf.xlu1 }
 0x1a5   : > { %v1273_v36 = vperm.slane %v1265_v31, %v3625_v37  ;;  %v1304_v45 = vrot.slane %v1261_v35, 4  ;;  %v1308_v46 = vrot.slane %v1269_v27, 4  ;;  %v1245_v47 = vperm.slane %v1239_v42, %v3615_v15 }
 0x1a6   : > { %v1249_v13 = vperm.slane %v1241_v43, %v3615_v15  ;;  %v3239_v49 = vunpack.i.h.bf16 %v3739_v21  ;;  %v3236_v61 = vunpack.i.l.bf16 %v3739_v21  ;;  %v3263_v5 = vunpack.i.h.bf16 %v3757_v40  ;;  %v3802_v28 = vpop.trf.xlu2 }
 0x1a7   : > { %v1312_v48 = vrot.slane %v1273_v36, 4  ;;  %v1274_v50 = vrot.slane %v1245_v47, 4  ;;  %v1277_v52 = vsel %vm354_vm0, %v1245_v47, %v1276_v39  ;;  %v3793_v25 = vsel %vm354_vm0, %v1086_v2, %v3685_v22  ;;  %v3271_v42 = vpop.trf.xlu0 }
 0x1a8   : > { %v1286_v53 = vrot.slane %v1249_v13, 4  ;;  %v1289_v54 = vsel %vm354_vm0, %v1249_v13, %v1288_v41  ;;  %v1285_v55 = vperm.slane %v1277_v52, %v3625_v37  ;;  %v1090_v59 = vrot.slane %v3239_v49, 4 }
 0x1a9   : > { %v1297_v56 = vperm.slane %v1289_v54, %v3625_v37  ;;  %v1275_v63 = vsel %vm354_vm0, %v1274_v50, %v1233_v29  ;;  %v1092_v17 = vrot.slane %v3263_v5, 4  ;;  %v1104_v22 = vrot.slane %v3236_v61, 4 }
 0x1aa   : > { %v1287_v3 = vsel %vm354_vm0, %v1286_v53, %v1237_v32  ;;  %v1281_v6 = vperm.slane %v1275_v63, %v3625_v37  ;;  %v1302_v9 = vrot.slane %v1285_v55, 4  ;;  %v3777_v10 = vsel %vm354_vm0, %v1285_v55, %v1304_v45 }
 0x1ab   : > { %v1293_v8 = vperm.slane %v1287_v3, %v3625_v37  ;;  %v1310_v11 = vrot.slane %v1297_v56, 4  ;;  %v3780_v12 = vsel %vm354_vm0, %v1297_v56, %v1312_v48  ;;  %v1091_v14 = vsel %vm354_vm0, %v1090_v59, %v3263_v5 }
 0x1ac   : > { %v1298_v18 = vrot.slane %v1281_v6, 4  ;;  %v3784_v19 = vsel %vm354_vm0, %v1281_v6, %v1300_v38  ;;  %v3787_v16 = vsel %vm354_vm0, %v1302_v9, %v1261_v35  ;;  %v1093_v44 = vsel %vm354_vm0, %v3239_v49, %v1092_v17  ;;  %v3252_v55 = vpop.trf.xlu1 }
 0x1ad   : > { %v1306_v23 = vrot.slane %v1293_v8, 4  ;;  %v3796_v26 = vsel %vm354_vm0, %v1293_v8, %v1308_v46  ;;  %v3799_v20 = vsel %vm354_vm0, %v1310_v11, %v1273_v36  ;;  %v3811_v51 = vperm.slane %v1091_v14, %v3615_v15 }
 0x1ae   : > { %v3805_v29 = vsel %vm354_vm0, %v1298_v18, %v1257_v57  ;;  %v3260_v2 = vunpack.i.l.bf16 %v3757_v40  ;;  %v3244_v31 = vunpack.i.h.bf16 %v3769_v62  ;;  %v1101_v32 = vperm.slane %v1093_v44, %v3615_v15 }
 0x1af   : > { %v3808_v30 = vsel %vm354_vm0, %v1306_v23, %v1269_v27  ;;  %v3241_v33 = vunpack.i.l.bf16 %v3769_v62  ;;  %v3268_v57 = vunpack.i.h.bf16 %v3802_v28  ;;  %v1140_v27 = vrot.slane %v3811_v51, 4 }
 0x1b0   : > { %v1128_v35 = vrot.slane %v3260_v2, 4  ;;  %v1314_v36 = vrot.slane %v3244_v31, 4  ;;  %v3265_v39 = vunpack.i.l.bf16 %v3802_v28  ;;  %v3251_v41 = vunpack.i.h.bf16 %v3247_v24 }
 0x1b1   : > { %v1316_v38 = vrot.slane %v3268_v57, 4  ;;  %v3248_v40 = vunpack.i.l.bf16 %v3247_v24  ;;  %v1152_v45 = vrot.slane %v1101_v32, 4  ;;  %v3825_v46 = vrot.slane %v3241_v33, 4 }
 0x1b2   : > { %v1315_v43 = vsel %vm354_vm0, %v1314_v36, %v3268_v57  ;;  %v1116_v13 = vrot.slane %v3251_v41, 4  ;;  %v3275_v52 = vunpack.i.h.bf16 %v3271_v42  ;;  %v1352_v53 = vrot.slane %v3265_v39, 4 }
 0x1b3   : > { %v1317_v47 = vsel %vm354_vm0, %v3244_v31, %v1316_v38  ;;  %v3829_v48 = vperm.slane %v1315_v43, %v3615_v15  ;;  %v1126_v49 = vrot.slane %v3248_v40, 4  ;;  %v1129_v50 = vsel %vm354_vm0, %v3248_v40, %v1128_v35 }
 0x1b4   : > { %v1137_v54 = vperm.slane %v1129_v50, %v3615_v15  ;;  %v3836_v56 = vperm.slane %v1317_v47, %v3615_v15  ;;  %v1114_v63 = vrot.slane %v3275_v52, 4  ;;  %v1117_v3 = vsel %vm354_vm0, %v3275_v52, %v1116_v13 }
 0x1b5   : > { %v1127_v59 = vsel %vm354_vm0, %v1126_v49, %v3260_v2  ;;  %v1125_v8 = vperm.slane %v1117_v3, %v3615_v15  ;;  %v3272_v9 = vunpack.i.l.bf16 %v3271_v42  ;;  %v3256_v14 = vunpack.i.h.bf16 %v3252_v55 }
 0x1b6   : > { %v1133_v5 = vperm.slane %v1127_v59, %v3615_v15  ;;  %v1174_v6 = vrot.slane %v1137_v54, 4  ;;  %v1115_v11 = vsel %vm354_vm0, %v1114_v63, %v3251_v41  ;;  %v1364_v44 = vrot.slane %v3829_v48, 4 }
 0x1b7   : > { %v1121_v18 = vperm.slane %v1115_v11, %v3615_v15  ;;  %v1176_v23 = vrot.slane %v1125_v8, 4  ;;  %v1102_v24 = vrot.slane %v3272_v9, 4  ;;  %v1376_v2 = vrot.slane %v3836_v56, 4 }
 0x1b8   : > { %v1162_v17 = vrot.slane %v1133_v5, 4  ;;  %v1105_v31 = vsel %vm354_vm0, %v3272_v9, %v1104_v22  ;;  %v1175_v57 = vsel %vm354_vm0, %v1174_v6, %v1125_v8  ;;  %v1340_v40 = vrot.slane %v3256_v14, 4 }
 0x1b9   : > { %v1164_v35 = vrot.slane %v1121_v18, 4  ;;  %v1103_v36 = vsel %vm354_vm0, %v1102_v24, %v3236_v61  ;;  %v1113_v38 = vperm.slane %v1105_v31, %v3615_v15  ;;  %v1177_v43 = vsel %vm354_vm0, %v1137_v54, %v1176_v23  ;;  %v3276_v54 = vpop.trf.xlu0 }
 0x1ba   : > { %v1163_v41 = vsel %vm354_vm0, %v1162_v17, %v1121_v18  ;;  %v1109_v42 = vperm.slane %v1103_v36, %v3615_v15  ;;  %v3253_v47 = vunpack.i.l.bf16 %v3252_v55  ;;  %v3858_v50 = vperm.slane %v1177_v43, %v3625_v37 }
 0x1bb   : > { %v1150_v13 = vrot.slane %v1113_v38, 4  ;;  %v1153_v22 = vsel %vm354_vm0, %v1113_v38, %v1152_v45  ;;  %v1165_v49 = vsel %vm354_vm0, %v1133_v5, %v1164_v35  ;;  %v3865_v59 = vperm.slane %v1163_v41, %v3625_v37 }
 0x1bc   : > { %v1138_v21 = vrot.slane %v1109_v42, 4  ;;  %v1141_v61 = vsel %vm354_vm0, %v1109_v42, %v1140_v27  ;;  %v3862_v52 = vperm.slane %v1153_v22, %v3625_v37  ;;  %v3872_v63 = vperm.slane %v1165_v49, %v3625_v37 }
 0x1bd   : > { %v3868_v55 = vperm.slane %v1141_v61, %v3625_v37  ;;  %v1151_v45 = vsel %vm354_vm0, %v1150_v13, %v1101_v32  ;;  %v3875_v3 = vperm.slane %v1175_v57, %v3625_v37  ;;  %v1198_v5 = vrot.slane %v3858_v50, 4 }
 0x1be   : > { %v1139_v27 = vsel %vm354_vm0, %v1138_v21, %v3811_v51  ;;  %v1350_v6 = vrot.slane %v3253_v47, 4  ;;  %v1353_v8 = vsel %vm354_vm0, %v3253_v47, %v1352_v53  ;;  %v1200_v11 = vrot.slane %v3862_v52, 4 }
 0x1bf   : > { %v3882_v9 = vperm.slane %v1139_v27, %v3625_v37  ;;  %v1361_v32 = vperm.slane %v1353_v8, %v3615_v15  ;;  %v3280_v17 = vunpack.i.h.bf16 %v3276_v54  ;;  %v3277_v23 = vunpack.i.l.bf16 %v3276_v54 }
 0x1c0   : > { %v1351_v18 = vsel %vm354_vm0, %v1350_v6, %v3265_v39  ;;  %v1192_v53 = vrot.slane %v3868_v55, 4  ;;  %v1157_v42 = vperm.slane %v1151_v45, %v3625_v37 }
 0x1c1   : > { %v1357_v51 = vperm.slane %v1351_v18, %v3615_v15  ;;  %v1398_v24 = vrot.slane %v1361_v32, 4  ;;  %v1338_v31 = vrot.slane %v3280_v17, 4  ;;  %v1341_v57 = vsel %vm354_vm0, %v3280_v17, %v1340_v40 }
 0x1c2   : > { %v1349_v35 = vperm.slane %v1341_v57, %v3615_v15  ;;  %v1326_v36 = vrot.slane %v3277_v23, 4  ;;  %v1329_v38 = vsel %vm354_vm0, %v3277_v23, %v3825_v46  ;;  %v5327_v57 = vrot.slane %v3753_v34, 4 }
 0x1c3   : > { %v1386_v41 = vrot.slane %v1357_v51, 4  ;;  %v1339_v28 = vsel %vm354_vm0, %v1338_v31, %v3256_v14  ;;  %v1337_v39 = vperm.slane %v1329_v38, %v3615_v15  ;;  %v1194_v14 = vrot.slane %v3875_v3, 4 }
 0x1c4   : > { %v1345_v43 = vperm.slane %v1339_v28, %v3615_v15  ;;  %v1400_v47 = vrot.slane %v1349_v35, 4  ;;  %v1327_v40 = vsel %vm354_vm0, %v1326_v36, %v3241_v33  ;;  %v1399_v13 = vsel %vm354_vm0, %v1398_v24, %v1349_v35 }
 0x1c5   : > { %v1333_v22 = vperm.slane %v1327_v40, %v3615_v15  ;;  %v1374_v49 = vrot.slane %v1337_v39, 4  ;;  %v1377_v46 = vsel %vm354_vm0, %v1337_v39, %v1376_v2  ;;  %v3916_v15 = vperm.slane %v1399_v13, %v3625_v37 }
 0x1c6   : > { %v1388_v21 = vrot.slane %v1345_v43, 4  ;;  %v3907_v61 = vperm.slane %v1377_v46, %v3625_v37  ;;  %v1387_v54 = vsel %vm354_vm0, %v1386_v41, %v1345_v43  ;;  %v1401_v45 = vsel %vm354_vm0, %v1361_v32, %v1400_v47 }
 0x1c7   : > { %v1362_v62 = vrot.slane %v1333_v22, 4  ;;  %v1365_v33 = vsel %vm354_vm0, %v1333_v22, %v1364_v44  ;;  %v3913_v27 = vperm.slane %v1387_v54, %v3625_v37  ;;  %v3923_v6 = vsel %vm354_vm0, %v1374_v49, %v3836_v56 }
 0x1c8   : > { %v3919_v2 = vperm.slane %v1365_v33, %v3625_v37  ;;  %v1389_v8 = vsel %vm354_vm0, %v1357_v51, %v1388_v21  ;;  %v3927_v32 = vperm.slane %v1401_v45, %v3625_v37  ;;  %v3941_v51 = vsel %vm354_vm0, %v1194_v14, %v1157_v42 }
 0x1c9   : > { %v1363_v44 = vsel %vm354_vm0, %v1362_v62, %v3829_v48  ;;  %v3932_v17 = vperm.slane %v1389_v8, %v3625_v37  ;;  %v1410_v18 = vrot.slane %v3913_v27, 4  ;;  %v1196_v31 = vrot.slane %v1157_v42, 4 }
 0x1ca   : > { %v3937_v24 = vperm.slane %v1363_v44, %v3625_v37  ;;  %v5340_v48 = vrot.slane %v3753_v34, 2  ;;  %v5314_v35 = vrot.slane %v3753_v34, 6  ;;  %v5313_v36 = vrot.slane %v3941_v51, 2 }
 0x1cb   : > { %v5312_v38 = vrot.slane %v3941_v51, 4  ;;  %v5311_v41 = vrot.slane %v3941_v51, 6  ;;  %v1862_v28 = vperm.slane %v3753_v34, 1  ;;  %v1864_v42 = vperm.slane %v5327_v57, 1 }
 0x1cc   : > { %v1863_v39 = vperm.slane %v5340_v48, 1  ;;  %v1865_v43 = vperm.slane %v5314_v35, 1  ;;  %v1866_v47 = vperm.slane %v3941_v51, 1  ;;  %v1867_v40 = vperm.slane %v5313_v36, 1 }
 0x1cd   : > { %v1868_v13 = vperm.slane %v5312_v38, 1  ;;  %v1869_v22 = vperm.slane %v5311_v41, 1  ;;  %v3966_v46 = vsel %vm354_vm0, %v3875_v3, %v1196_v31  ;;  %v3972_v14 = vsel %vm354_vm0, %v3858_v50, %v1200_v11 }
 0x1ce   : > { %v1922_v49 = vsel %vm1562_vm1, %v1863_v39, %v1862_v28  ;;  %5393 = vst [vmem:[#allocation7_spill] sm:$0xff] %v3966_v46  ;;  %v5317_v54 = vrot.slane %v3714_v60, 2  ;;  %v5315_v45 = vrot.slane %v3714_v60, 4  ;;  %v5316_v62 = vrot.slane %v3714_v60, 6 }
 0x1cf   : > { %5394 = vst [vmem:[#allocation8_spill] sm:$0xff] %v3972_v14  ;;  %v1923_v21 = vsel %vm1564_vm2, %v1864_v42, %v1922_v49  ;;  %v5318_v8 = vrot.slane %v3966_v46, 2  ;;  %v5325_v3 = vrot.slane %v3966_v46, 4  ;;  %v5319_v44 = vrot.slane %v3966_v46, 6 }
 0x1d0   : > { %v1924_v33 = vsel %vm1566_vm3, %v1865_v43, %v1923_v21  ;;  %v5321_v11 = vrot.slane %v3726_v0, 2  ;;  %v5320_v28 = vrot.slane %v3726_v0, 4  ;;  %v5322_v39 = vrot.slane %v3726_v0, 6 }
 0x1d1   : > { %v1925_v31 = vsel %vm1568_vm4, %v1866_v47, %v1924_v33  ;;  %v5323_v49 = vrot.slane %v3972_v14, 2  ;;  %v5324_v43 = vrot.slane %v3972_v14, 4  ;;  %v5326_v21 = vrot.slane %v3972_v14, 6 }
 0x1d2   : > { %v1926_v42 = vsel %vm1570_vm5, %v1867_v40, %v1925_v31  ;;  %v1670_v41 = vperm.slane %v3714_v60, 0  ;;  %v1671_v47 = vperm.slane %v5317_v54, 0  ;;  %v1672_v33 = vperm.slane %v5315_v45, 0 }
 0x1d3   : > { %v1927_v23 = vsel %vm1572_vm6, %v1868_v13, %v1926_v42  ;;  %v1673_v40 = vperm.slane %v5316_v62, 0  ;;  %v1674_v31 = vperm.slane %v3966_v46, 0  ;;  %v1675_v36 = vperm.slane %v5318_v8, 0 }
 0x1d4   : > { %v1968_v38 = vsel %vm1640_vm7, 0.0, %v1927_v23  ;;  %v1676_v13 = vperm.slane %v5325_v3, 0  ;;  %v1677_v42 = vperm.slane %v5319_v44, 0  ;;  %v1679_v45 = vperm.slane %v5321_v11, 0 }
 0x1d5   : > { %v3291_v35 = vpack.i.bf16 %v1869_v22, %v1968_v38  ;;  %v1678_v23 = vperm.slane %v3726_v0, 0  ;;  %v1680_v62 = vperm.slane %v5320_v28, 0  ;;  %v1681_v54 = vperm.slane %v5322_v39, 0 }
 0x1d6   : > { %v1682_v8 = vperm.slane %v3972_v14, 0  ;;  %v1683_v38 = vperm.slane %v5323_v49, 0  ;;  %v1684_v22 = vperm.slane %v5324_v43, 0  ;;  %v1685_v44 = vperm.slane %v5326_v21, 0 }
 0x1d7   : > { %3292 = vrot.lane.b32.xlu0 %v3291_v35, %s3506_s18  ;;  %v1740_v28 = vsel %vm1718_vm8, %v1671_v47, %v1670_v41  ;;  %v1747_v11 = vsel %vm1718_vm8, %v1679_v45, %v1678_v23  ;;  %v4027_v39 = vsel %vm354_vm0, %v3872_v63, %v1192_v53  ;;  %v5333_v35 = vrot.slane %v3711_v58, 2 }
 0x1d8   : > { %5395 = vst [vmem:[#allocation9_spill] sm:$0xff] %v4027_v39  ;;  %v1741_v49 = vsel %vm1562_vm1, %v1672_v33, %v1740_v28  ;;  %v1748_v43 = vsel %vm1562_vm1, %v1680_v62, %v1747_v11  ;;  %v5332_v3 = vrot.slane %v3711_v58, 4  ;;  %v5331_v21 = vrot.slane %v3711_v58, 6 }
 0x1d9   : > { %v1742_v41 = vsel %vm1564_vm2, %v1673_v40, %v1741_v49  ;;  %v1749_v45 = vsel %vm1564_vm2, %v1681_v54, %v1748_v43  ;;  %v5330_v47 = vrot.slane %v4027_v39, 2  ;;  %v5329_v57 = vrot.slane %v4027_v39, 4 }
 0x1da   : > { %v1743_v23 = vsel %vm1566_vm3, %v1674_v31, %v1742_v41  ;;  %v1750_v53 = vsel %vm1566_vm3, %v1682_v8, %v1749_v45  ;;  %v5328_v28 = vrot.slane %v4027_v39, 6  ;;  %v1663_v33 = vperm.slane %v5333_v35, 0 }
 0x1db   : > { %v1744_v62 = vsel %vm1568_vm4, %v1675_v36, %v1743_v23  ;;  %v1751_v11 = vsel %vm1568_vm4, %v1683_v38, %v1750_v53  ;;  %v1664_v54 = vperm.slane %v5332_v3, 0  ;;  %v1662_v8 = vperm.slane %v3711_v58, 0 }
 0x1dc   : > { %v1745_v49 = vsel %vm1570_vm5, %v1676_v13, %v1744_v62  ;;  %v1752_v43 = vsel %vm1570_vm5, %v1684_v22, %v1751_v11  ;;  %v1665_v40 = vperm.slane %v5331_v21, 0  ;;  %v1666_v38 = vperm.slane %v4027_v39, 0 }
 0x1dd   : > { %v1746_v31 = vsel %vm1572_vm6, %v1677_v42, %v1745_v49  ;;  %v1753_v36 = vsel %vm1572_vm6, %v1685_v44, %v1752_v43  ;;  %v1667_v41 = vperm.slane %v5330_v47, 0  ;;  %v1668_v13 = vperm.slane %v5329_v57, 0 }
 0x1de   : > { %v3286_v45 = vpack.i.bf16 %v1753_v36, %v1746_v31  ;;  %v1669_v22 = vperm.slane %v5328_v28, 0  ;;  %v1733_v23 = vsel %vm1718_vm8, %v1663_v33, %v1662_v8  ;;  %v4065_v42 = vperm.slane %v3923_v6, %v3625_v37 }
 0x1df   : > { %v1734_v53 = vsel %vm1562_vm1, %v1664_v54, %v1733_v23  ;;  %v1418_v44 = vrot.slane %v3916_v15, 4  ;;  %v5339_v62 = vrot.slane %v3808_v30, 2  ;;  %v5338_v49 = vrot.slane %v3808_v30, 4 }
 0x1e0   : > { %3287 = vrot.lane.b32.xlu2 %v3286_v45, %s3507_s25  ;;  %v1735_v11 = vsel %vm1564_vm2, %v1665_v40, %v1734_v53  ;;  %v5337_v43 = vrot.slane %v3808_v30, 6  ;;  %v1894_v33 = vperm.slane %v3808_v30, 1  ;;  %v4105_v47 = vsel %vm354_vm0, %v1198_v5, %v3862_v52 }
 0x1e1   : > { %v1736_v54 = vsel %vm1566_vm3, %v1666_v38, %v1735_v11  ;;  %v4077_v37 = vsel %vm354_vm0, %v1418_v44, %v4065_v42  ;;  %v1895_v8 = vperm.slane %v5339_v62, 1  ;;  %v1896_v38 = vperm.slane %v5338_v49, 1 }
 0x1e2   : > { %v1737_v31 = vsel %vm1568_vm4, %v1667_v41, %v1736_v54  ;;  %v5336_v40 = vrot.slane %v4077_v37, 2  ;;  %v5335_v36 = vrot.slane %v4077_v37, 4  ;;  %v5334_v45 = vrot.slane %v4077_v37, 6 }
 0x1e3   : > { %v1738_v23 = vsel %vm1570_vm5, %v1668_v13, %v1737_v31  ;;  %v1897_v53 = vperm.slane %v5337_v43, 1  ;;  %v1898_v44 = vperm.slane %v4077_v37, 1  ;;  %v5341_v13 = vmov 0.0  }
 0x1e4   : > { %v1739_v11 = vsel %vm1572_vm6, %v1669_v22, %v1738_v23  ;;  %v1899_v41 = vperm.slane %v5336_v40, 1  ;;  %v1900_v54 = vperm.slane %v5335_v36, 1  ;;  %v1901_v28 = vperm.slane %v5334_v45, 1 }
 0x1e5   : > { %v3281_v31 = vpack.i.bf16 %v1739_v11, %v5341_v13  ;;  %v1946_v57 = vsel %vm1562_vm1, %v1895_v8, %v1894_v33  ;;  %v4111_v22 = vsel %vm354_vm0, %v1410_v18, %v3937_v24  ;;  %v1816_v21 = vrot.slane %v3793_v25, 2 }
 0x1e6   : > { %v1947_v23 = vsel %vm1564_vm2, %v1896_v38, %v1946_v57  ;;  %v1817_v11 = vrot.slane %v3793_v25, 4  ;;  %v1818_v33 = vrot.slane %v3793_v25, 6  ;;  %v1819_v52 = vrot.slane %v4105_v47, 2 }
 0x1e7   : > { %3282 = vrot.lane.b32.xlu1 %v3281_v31, %s3507_s25  ;;  %v1948_v50 = vsel %vm1566_vm3, %v1897_v53, %v1947_v23  ;;  %v1820_v5 = vrot.slane %v4105_v47, 4  ;;  %v1821_v8 = vrot.slane %v4105_v47, 6  ;;  %v5343_v57 = vrot.slane %v3805_v29, 2 }
 0x1e8   : > { %v1949_v18 = vsel %vm1568_vm4, %v1898_v44, %v1948_v50  ;;  %v5344_v38 = vrot.slane %v3805_v29, 4  ;;  %v5347_v3 = vrot.slane %v3805_v29, 6  ;;  %v5352_v31 = vrot.slane %v4111_v22, 2 }
 0x1e9   : > { %v1950_v35 = vsel %vm1570_vm5, %v1899_v41, %v1949_v18  ;;  %v5355_v53 = vrot.slane %v4111_v22, 4  ;;  %v5358_v23 = vrot.slane %v4111_v22, 6  ;;  %v1998_v36 = vperm.slane %v3793_v25, 0 }
 0x1ea   : > { %v1951_v45 = vsel %vm1572_vm6, %v1900_v54, %v1950_v35  ;;  %v1999_v40 = vperm.slane %v1816_v21, 0  ;;  %v2000_v44 = vperm.slane %v1817_v11, 0  ;;  %v2001_v43 = vperm.slane %v1818_v33, 0 }
 0x1eb   : > { %v1972_v50 = vsel %vm1640_vm7, 0.0, %v1951_v45  ;;  %v2002_v49 = vperm.slane %v4105_v47, 0  ;;  %v2003_v62 = vperm.slane %v1819_v52, 0  ;;  %v2004_v41 = vperm.slane %v1820_v5, 0 }
 0x1ec   : > { %v3336_v6 = vpack.i.bf16 %v1901_v28, %v1972_v50  ;;  %v2005_v18 = vperm.slane %v1821_v8, 0  ;;  %v2006_v48 = vperm.slane %v3805_v29, 0  ;;  %v2007_v56 = vperm.slane %v5343_v57, 0 }
 0x1ed   : > { %v2008_v35 = vperm.slane %v5344_v38, 0  ;;  %v2009_v54 = vperm.slane %v5347_v3, 0  ;;  %v2010_v45 = vperm.slane %v4111_v22, 0  ;;  %v2011_v28 = vperm.slane %v5352_v31, 0 }
 0x1ee   : > { %3337 = vrot.lane.b32.xlu0 %v3336_v6, %s3506_s18  ;;  %v2012_v50 = vperm.slane %v5355_v53, 0  ;;  %v2013_v13 = vperm.slane %v5358_v23, 0  ;;  %v2059_v57 = vsel %vm1718_vm8, %v1999_v40, %v1998_v36  ;;  %v2066_v14 = vsel %vm1718_vm8, %v2007_v56, %v2006_v48 }
 0x1ef   : > { %v2060_v38 = vsel %vm1562_vm1, %v2000_v44, %v2059_v57  ;;  %v1870_v3 = vperm.slane %v3793_v25, 1  ;;  %v1871_v0 = vperm.slane %v1816_v21, 1  ;;  %v2067_v39 = vsel %vm1562_vm1, %v2008_v35, %v2066_v14 }
 0x1f0   : > { %v2061_v6 = vsel %vm1564_vm2, %v2001_v43, %v2060_v38  ;;  %v1872_v31 = vperm.slane %v1817_v11, 1  ;;  %v1873_v46 = vperm.slane %v1818_v33, 1  ;;  %v2068_v58 = vsel %vm1564_vm2, %v2009_v54, %v2067_v39 }
 0x1f1   : > { %v2062_v53 = vsel %vm1566_vm3, %v2002_v49, %v2061_v6  ;;  %v1874_v23 = vperm.slane %v4105_v47, 1  ;;  %v1875_v40 = vperm.slane %v1819_v52, 1  ;;  %v2069_v56 = vsel %vm1566_vm3, %v2010_v45, %v2068_v58 }
 0x1f2   : > { %v2063_v36 = vsel %vm1568_vm4, %v2003_v62, %v2062_v53  ;;  %v1876_v48 = vperm.slane %v1820_v5, 1  ;;  %v1877_v25 = vperm.slane %v1821_v8, 1  ;;  %v2070_v43 = vsel %vm1568_vm4, %v2011_v28, %v2069_v56 }
 0x1f3   : > { %v2064_v21 = vsel %vm1570_vm5, %v2004_v41, %v2063_v36  ;;  %v1928_v14 = vsel %vm1562_vm1, %v1871_v0, %v1870_v3  ;;  %v5396_v11 = vmov 0.0   ;;  %v2071_v47 = vsel %vm1570_vm5, %v2012_v50, %v2070_v43 }
 0x1f4   : > { %v4164_v33 = vrot.slane %v5396_v11, 2  ;;  %v2065_v39 = vsel %vm1572_vm6, %v2005_v18, %v2064_v21  ;;  %v1929_v49 = vsel %vm1564_vm2, %v1872_v31, %v1928_v14  ;;  %v4170_v62 = vrot.slane %v5396_v11, 4 }
 0x1f5   : > { %v2072_v58 = vsel %vm1572_vm6, %v2013_v13, %v2071_v47  ;;  %v1930_v52 = vsel %vm1566_vm3, %v1873_v46, %v1929_v49  ;;  %v4175_v5 = vrot.slane %v5396_v11, 6  ;;  %v1494_v0 = vperm.slane %v5396_v11, 1 }
 0x1f6   : > { %v3306_v3 = vpack.i.bf16 %v2072_v58, %v2065_v39  ;;  %v1931_v8 = vsel %vm1568_vm4, %v1874_v23, %v1930_v52  ;;  %v1495_v57 = vperm.slane %v4164_v33, 1  ;;  %v1496_v38 = vperm.slane %v4170_v62, 1 }
 0x1f7   : > { %v1932_v31 = vsel %vm1570_vm5, %v1875_v40, %v1931_v8  ;;  %v4183_v53 = vperm.slane %v4175_v5, 1  ;;  %v1412_v13 = vrot.slane %v3937_v24, 4  ;;  %v5397_v46 = vrot.slane %v3919_v2, 4 }
 0x1f8   : > { %3307 = vrot.lane.b32.xlu2 %v3306_v3, %s3509_s5  ;;  %v1933_v23 = vsel %vm1572_vm6, %v1876_v48, %v1932_v31  ;;  %v1563_v41 = vsel %vm1562_vm1, %v1495_v57, %v1494_v0  ;;  %v5379_v18 = vrot.slane %v3784_v19, 2  ;;  %v5366_v35 = vrot.slane %v3784_v19, 4 }
 0x1f9   : > { %v4190_v44 = vsel %vm354_vm0, %v3932_v17, %v5397_v46  ;;  %v1969_v54 = vsel %vm1640_vm7, 0.0, %v1933_v23  ;;  %v1565_v24 = vsel %vm1564_vm2, %v1496_v38, %v1563_v41  ;;  %v4201_v45 = vsel %vm354_vm0, %v3913_v27, %v1412_v13 }
 0x1fa   : > { %v5363_v28 = vrot.slane %v3784_v19, 6  ;;  %v3296_v50 = vpack.i.bf16 %v1877_v25, %v1969_v54  ;;  %v4206_v6 = vsel %vm1566_vm3, %v4183_v53, %v1565_v24  ;;  %v5361_v40 = vrot.slane %v4201_v45, 2 }
 0x1fb   : > { %v5360_v36 = vrot.slane %v4201_v45, 4  ;;  %v1569_v56 = vsel %vm1568_vm4, %v1494_v0, %v4206_v6  ;;  %v5359_v48 = vrot.slane %v4201_v45, 6  ;;  %v5368_v21 = vrot.slane %v3777_v10, 2 }
 0x1fc   : > { %v5364_v27 = vrot.slane %v3777_v10, 4  ;;  %3297 = vrot.lane.b32.xlu1 %v3296_v50, %s3506_s18  ;;  %v1571_v25 = vsel %vm1570_vm5, %v1495_v57, %v1569_v56  ;;  %v5362_v43 = vrot.slane %v3777_v10, 6  ;;  %v5365_v14 = vrot.slane %v4190_v44, 2 }
 0x1fd   : > { %v5367_v39 = vrot.slane %v4190_v44, 4  ;;  %v1573_v47 = vsel %vm1572_vm6, %v1496_v38, %v1571_v25  ;;  %v5369_v49 = vrot.slane %v4190_v44, 6  ;;  %v1686_v58 = vperm.slane %v3784_v19, 0 }
 0x1fe   : > { %v1687_v52 = vperm.slane %v5379_v18, 0  ;;  %v4226_v0 = vsel %vm1640_vm7, 0.0, %v1573_v47  ;;  %v1688_v3 = vperm.slane %v5366_v35, 0  ;;  %v1689_v8 = vperm.slane %v5363_v28, 0 }
 0x1ff   : > { %v1690_v57 = vperm.slane %v4201_v45, 0  ;;  %v3351_v38 = vpack.i.bf16 %v4183_v53, %v4226_v0  ;;  %v1691_v31 = vperm.slane %v5361_v40, 0  ;;  %v1692_v13 = vperm.slane %v5360_v36, 0 }
 0x200   : > { %v1693_v46 = vperm.slane %v5359_v48, 0  ;;  %v1694_v23 = vperm.slane %v3777_v10, 0  ;;  %v1695_v41 = vperm.slane %v5368_v21, 0  ;;  %v1696_v54 = vperm.slane %v5364_v27, 0 }
 0x201   : > { %v1697_v24 = vperm.slane %v5362_v43, 0  ;;  %3352 = vrot.lane.b32.xlu0 %v3351_v38, %s3506_s18  ;;  %v1698_v50 = vperm.slane %v4190_v44, 0  ;;  %v1699_v56 = vperm.slane %v5365_v14, 0  ;;  %v1700_v25 = vperm.slane %v5367_v39, 0 }
 0x202   : > { %v1701_v47 = vperm.slane %v5369_v49, 0  ;;  %v1754_v48 = vsel %vm1718_vm8, %v1687_v52, %v1686_v58  ;;  %v1761_v36 = vsel %vm1718_vm8, %v1695_v41, %v1694_v23  ;;  %v1990_v40 = vperm.slane %v3753_v34, 0 }
 0x203   : > { %v5398_v43 = vrot.slane %v3753_v34, 2  ;;  %v1755_v28 = vsel %vm1562_vm1, %v1688_v3, %v1754_v48  ;;  %v1762_v27 = vsel %vm1562_vm1, %v1696_v54, %v1761_v36  ;;  %v5399_v14 = vrot.slane %v3753_v34, 4 }
 0x204   : > { %v5400_v39 = vrot.slane %v3753_v34, 6  ;;  %v1756_v49 = vsel %vm1564_vm2, %v1689_v8, %v1755_v28  ;;  %v1763_v58 = vsel %vm1564_vm2, %v1697_v24, %v1762_v27  ;;  %v1994_v52 = vperm.slane %v3941_v51, 0 }
 0x205   : > { %v1991_v38 = vperm.slane %v5398_v43, 0  ;;  %v1992_v35 = vperm.slane %v5399_v14, 0  ;;  %v5401_v23 = vrot.slane %v3941_v51, 2  ;;  %v1757_v43 = vsel %vm1566_vm3, %v1690_v57, %v1756_v49 }
 0x206   : > { %v1993_v21 = vperm.slane %v5400_v39, 0  ;;  %v1764_v48 = vsel %vm1566_vm3, %v1698_v50, %v1763_v58  ;;  %v5402_v36 = vrot.slane %v3941_v51, 4  ;;  %v5403_v14 = vrot.slane %v3941_v51, 6 }
 0x207   : > { %v1995_v41 = vperm.slane %v5401_v23, 0  ;;  %v1758_v39 = vsel %vm1568_vm4, %v1691_v31, %v1757_v43  ;;  %v1765_v28 = vsel %vm1568_vm4, %v1699_v56, %v1764_v48  ;;  %v2052_v27 = vsel %vm1718_vm8, %v1991_v38, %v1990_v40 }
 0x208   : > { %v1996_v3 = vperm.slane %v5402_v36, 0  ;;  %v1997_v34 = vperm.slane %v5403_v14, 0  ;;  %v1190_v8 = vrot.slane %v3872_v63, 4  ;;  %v1759_v54 = vsel %vm1570_vm5, %v1692_v13, %v1758_v39 }
 0x209   : > { %v1766_v49 = vsel %vm1570_vm5, %v1700_v25, %v1765_v28  ;;  %v2053_v57 = vsel %vm1562_vm1, %v1992_v35, %v2052_v27  ;;  %v1804_v24 = vrot.slane %v3722_v4, 2  ;;  %v1760_v50 = vsel %vm1572_vm6, %v1693_v46, %v1759_v54 }
 0x20a   : > { %v1767_v51 = vsel %vm1572_vm6, %v1701_v47, %v1766_v49  ;;  %v2054_v31 = vsel %vm1564_vm2, %v1993_v21, %v2053_v57  ;;  %v4291_v56 = vsel %vm354_vm0, %v1190_v8, %v3868_v55  ;;  %v5387_v13 = vrot.slane %v3722_v4, 4 }
 0x20b   : > { %v3316_v40 = vpack.i.bf16 %v1767_v51, %v1760_v50  ;;  %v2055_v63 = vsel %vm1566_vm3, %v1994_v52, %v2054_v31  ;;  %v5386_v25 = vrot.slane %v3722_v4, 6  ;;  %v5385_v38 = vrot.slane %v4291_v56, 2 }
 0x20c   : > { %v2056_v35 = vsel %vm1568_vm4, %v1995_v41, %v2055_v63  ;;  %v5384_v46 = vrot.slane %v4291_v56, 4  ;;  %v5381_v47 = vrot.slane %v4291_v56, 6  ;;  %v1854_v21 = vperm.slane %v3722_v4, 1 }
 0x20d   : > { %3317 = vrot.lane.b32.xlu2 %v3316_v40, %s3507_s25  ;;  %v2057_v55 = vsel %vm1570_vm5, %v1996_v3, %v2056_v35  ;;  %v1855_v58 = vperm.slane %v1804_v24, 1  ;;  %v1856_v52 = vperm.slane %v5387_v13, 1  ;;  %v1857_v41 = vperm.slane %v5386_v25, 1 }
 0x20e   : > { %v2058_v23 = vsel %vm1572_vm6, %v1997_v34, %v2057_v55  ;;  %v1858_v43 = vperm.slane %v4291_v56, 1  ;;  %v1859_v48 = vperm.slane %v5385_v38, 1  ;;  %v1860_v3 = vperm.slane %v5384_v46, 1 }
 0x20f   : > { %v3301_v36 = vpack.i.bf16 %v2058_v23, %v5396_v11  ;;  %v1861_v14 = vperm.slane %v5381_v47, 1  ;;  %v1916_v39 = vsel %vm1562_vm1, %v1855_v58, %v1854_v21  ;;  %v5404_v28 = vrot.slane %v4065_v42, 4 }
 0x210   : > { %v1917_v34 = vsel %vm1564_vm2, %v1856_v52, %v1916_v39  ;;  %v5405_v8 = vrot.slane %v3907_v61, 4  ;;  %v5378_v49 = vrot.slane %v3796_v26, 2  ;;  %v5376_v50 = vrot.slane %v3796_v26, 4 }
 0x211   : > { %v4324_v27 = vsel %vm354_vm0, %v3916_v15, %v5404_v28  ;;  %3302 = vrot.lane.b32.xlu1 %v3301_v36, %s3509_s5  ;;  %v1918_v57 = vsel %vm1566_vm3, %v1857_v41, %v1917_v34  ;;  %v5370_v42 = vrot.slane %v3796_v26, 6  ;;  %v5374_v63 = vrot.slane %v3780_v12, 2 }
 0x212   : > { %v4330_v54 = vsel %vm354_vm0, %v3927_v32, %v5405_v8  ;;  %v5373_v51 = vrot.slane %v4324_v27, 2  ;;  %v1919_v15 = vsel %vm1568_vm4, %v1858_v43, %v1918_v57  ;;  %v5371_v31 = vrot.slane %v4324_v27, 4 }
 0x213   : > { %v5372_v40 = vrot.slane %v4324_v27, 6  ;;  %v1920_v35 = vsel %vm1570_vm5, %v1859_v48, %v1919_v15  ;;  %v5375_v55 = vrot.slane %v3780_v12, 4  ;;  %v5377_v21 = vrot.slane %v3780_v12, 6 }
 0x214   : > { %v5380_v58 = vrot.slane %v4330_v54, 2  ;;  %v1921_v52 = vsel %vm1572_vm6, %v1860_v3, %v1920_v35  ;;  %v5382_v23 = vrot.slane %v4330_v54, 4  ;;  %v5383_v41 = vrot.slane %v4330_v54, 6 }
 0x215   : > { %v1702_v43 = vperm.slane %v3796_v26, 0  ;;  %v1967_v36 = vsel %vm1640_vm7, 0.0, %v1921_v52  ;;  %v1703_v39 = vperm.slane %v5378_v49, 0  ;;  %v1704_v48 = vperm.slane %v5376_v50, 0 }
 0x216   : > { %v1705_v34 = vperm.slane %v5370_v42, 0  ;;  %v3366_v28 = vpack.i.bf16 %v1861_v14, %v1967_v36  ;;  %v1706_v3 = vperm.slane %v4324_v27, 0  ;;  %v1707_v8 = vperm.slane %v5373_v51, 0 }
 0x217   : > { %v1708_v57 = vperm.slane %v5371_v31, 0  ;;  %v1709_v15 = vperm.slane %v5372_v40, 0  ;;  %v1710_v35 = vperm.slane %v3780_v12, 0  ;;  %v1711_v52 = vperm.slane %v5374_v63, 0 }
 0x218   : > { %v1712_v42 = vperm.slane %v5375_v55, 0  ;;  %3367 = vrot.lane.b32.xlu0 %v3366_v28, %s3506_s18  ;;  %v1713_v14 = vperm.slane %v5377_v21, 0  ;;  %v1714_v36 = vperm.slane %v4330_v54, 0  ;;  %v1715_v31 = vperm.slane %v5380_v58, 0 }
 0x219   : > { %v1716_v40 = vperm.slane %v5382_v23, 0  ;;  %v1717_v51 = vperm.slane %v5383_v41, 0  ;;  %v1768_v63 = vsel %vm1718_vm8, %v1703_v39, %v1702_v43  ;;  %v1775_v55 = vsel %vm1718_vm8, %v1711_v52, %v1710_v35 }
 0x21a   : > { %v1878_v28 = vperm.slane %v3805_v29, 1  ;;  %v1769_v50 = vsel %vm1562_vm1, %v1704_v48, %v1768_v63  ;;  %v1776_v21 = vsel %vm1562_vm1, %v1712_v42, %v1775_v55  ;;  %v5406_v49 = vrot.slane %v3805_v29, 2 }
 0x21b   : > { %v5407_v58 = vrot.slane %v3805_v29, 4  ;;  %v1770_v23 = vsel %vm1564_vm2, %v1705_v34, %v1769_v50  ;;  %v1777_v41 = vsel %vm1564_vm2, %v1713_v14, %v1776_v21  ;;  %v5408_v43 = vrot.slane %v3805_v29, 6 }
 0x21c   : > { %v1879_v18 = vperm.slane %v5406_v49, 1  ;;  %v1882_v35 = vperm.slane %v4111_v22, 1  ;;  %v1771_v52 = vsel %vm1566_vm3, %v1706_v3, %v1770_v23  ;;  %v1778_v63 = vsel %vm1566_vm3, %v1714_v36, %v1777_v41 }
 0x21d   : > { %v1880_v47 = vperm.slane %v5407_v58, 1  ;;  %v1881_v39 = vperm.slane %v5408_v43, 1  ;;  %v5409_v42 = vrot.slane %v4111_v22, 2  ;;  %v5410_v49 = vrot.slane %v4111_v22, 4 }
 0x21e   : > { %v1772_v58 = vsel %vm1568_vm4, %v1707_v8, %v1771_v52  ;;  %v1779_v50 = vsel %vm1568_vm4, %v1715_v31, %v1778_v63  ;;  %v5411_v21 = vrot.slane %v4111_v22, 6  ;;  %v1934_v34 = vsel %vm1562_vm1, %v1879_v18, %v1878_v28 }
 0x21f   : > { %v1883_v55 = vperm.slane %v5409_v42, 1  ;;  %v1884_v48 = vperm.slane %v5410_v49, 1  ;;  %v1773_v14 = vsel %vm1570_vm5, %v1708_v57, %v1772_v58  ;;  %v1780_v23 = vsel %vm1570_vm5, %v1716_v40, %v1779_v50 }
 0x220   : > { %v1885_v29 = vperm.slane %v5411_v21, 1  ;;  %v1935_v41 = vsel %vm1564_vm2, %v1880_v47, %v1934_v34  ;;  %v1422_v3 = vrot.slane %v3927_v32, 4  ;;  %v1774_v36 = vsel %vm1572_vm6, %v1709_v15, %v1773_v14 }
 0x221   : > { %v1781_v43 = vsel %vm1572_vm6, %v1717_v51, %v1780_v23  ;;  %v1936_v8 = vsel %vm1566_vm3, %v1881_v39, %v1935_v41  ;;  %v1840_v31 = vrot.slane %v3799_v20, 2  ;;  %v1841_v40 = vrot.slane %v3799_v20, 4 }
 0x222   : > { %v3326_v22 = vpack.i.bf16 %v1781_v43, %v1774_v36  ;;  %v1937_v52 = vsel %vm1568_vm4, %v1882_v35, %v1936_v8  ;;  %v4415_v18 = vsel %vm354_vm0, %v1422_v3, %v3907_v61  ;;  %v1842_v32 = vrot.slane %v3799_v20, 6 }
 0x223   : > { %v1938_v47 = vsel %vm1570_vm5, %v1883_v55, %v1937_v52  ;;  %v1843_v57 = vrot.slane %v4415_v18, 2  ;;  %v1844_v51 = vrot.slane %v4415_v18, 4  ;;  %v1845_v28 = vrot.slane %v4415_v18, 6 }
 0x224   : > { %3327 = vrot.lane.b32.xlu2 %v3326_v22, %s3507_s25  ;;  %v1939_v15 = vsel %vm1572_vm6, %v1884_v48, %v1938_v47  ;;  %v1902_v39 = vperm.slane %v3799_v20, 1  ;;  %v1903_v61 = vperm.slane %v1840_v31, 1  ;;  %v1904_v63 = vperm.slane %v1841_v40, 1 }
 0x225   : > { %v1970_v35 = vsel %vm1640_vm7, 0.0, %v1939_v15  ;;  %v1905_v42 = vperm.slane %v1842_v32, 1  ;;  %v1906_v55 = vperm.slane %v4415_v18, 1  ;;  %v1907_v48 = vperm.slane %v1843_v57, 1 }
 0x226   : > { %v3311_v49 = vpack.i.bf16 %v1885_v29, %v1970_v35  ;;  %v1908_v58 = vperm.slane %v1844_v51, 1  ;;  %v1909_v50 = vperm.slane %v1845_v28, 1  ;;  %v1952_v21 = vsel %vm1562_vm1, %v1903_v61, %v1902_v39 }
 0x227   : > { %v1414_v34 = vrot.slane %v3932_v17, 4  ;;  %v1828_v14 = vrot.slane %v3787_v16, 2  ;;  %v1829_v23 = vrot.slane %v3787_v16, 4  ;;  %v1953_v29 = vsel %vm1564_vm2, %v1904_v63, %v1952_v21 }
 0x228   : > { %3312 = vrot.lane.b32.xlu1 %v3311_v49, %s3506_s18  ;;  %v1830_v41 = vrot.slane %v3787_v16, 6  ;;  %v1886_v3 = vperm.slane %v3787_v16, 1  ;;  %v2014_v36 = vperm.slane %v3787_v16, 0  ;;  %v1954_v43 = vsel %vm1566_vm3, %v1905_v42, %v1953_v29 }
 0x229   : > { %v1415_v8 = vsel %vm354_vm0, %v1414_v34, %v3919_v2  ;;  %v1887_v17 = vperm.slane %v1828_v14, 1  ;;  %v1888_v22 = vperm.slane %v1829_v23, 1  ;;  %v1955_v52 = vsel %vm1568_vm4, %v1906_v55, %v1954_v43 }
 0x22a   : > { %v1831_v47 = vrot.slane %v1415_v8, 2  ;;  %v1832_v15 = vrot.slane %v1415_v8, 4  ;;  %v1833_v39 = vrot.slane %v1415_v8, 6  ;;  %v1956_v61 = vsel %vm1570_vm5, %v1907_v48, %v1955_v52 }
 0x22b   : > { %v1889_v35 = vperm.slane %v1830_v41, 1  ;;  %v1890_v63 = vperm.slane %v1415_v8, 1  ;;  %v1940_v49 = vsel %vm1562_vm1, %v1887_v17, %v1886_v3  ;;  %v1957_v16 = vsel %vm1572_vm6, %v1908_v58, %v1956_v61 }
 0x22c   : > { %v1891_v21 = vperm.slane %v1831_v47, 1  ;;  %v1892_v42 = vperm.slane %v1832_v15, 1  ;;  %v1893_v29 = vperm.slane %v1833_v39, 1  ;;  %v1973_v2 = vsel %vm1640_vm7, 0.0, %v1957_v16 }
 0x22d   : > { %v1941_v34 = vsel %vm1564_vm2, %v1888_v22, %v1940_v49  ;;  %v2015_v46 = vperm.slane %v1828_v14, 0  ;;  %v2016_v55 = vperm.slane %v1829_v23, 0  ;;  %v3341_v43 = vpack.i.bf16 %v1909_v50, %v1973_v2 }
 0x22e   : > { %v1942_v38 = vsel %vm1566_vm3, %v1889_v35, %v1941_v34  ;;  %v2017_v25 = vperm.slane %v1830_v41, 0  ;;  %v2018_v48 = vperm.slane %v1415_v8, 0  ;;  %v2019_v13 = vperm.slane %v1831_v47, 0 }
 0x22f   : > { %v1943_v52 = vsel %vm1568_vm4, %v1890_v63, %v1942_v38  ;;  %v2020_v3 = vperm.slane %v1832_v15, 0  ;;  %v2021_v17 = vperm.slane %v1833_v39, 0  ;;  %3342 = vrot.lane.b32.xlu2 %v3341_v43, %s3506_s18  ;;  %v2022_v61 = vperm.slane %v3808_v30, 0 }
 0x230   : > { %v1944_v58 = vsel %vm1570_vm5, %v1891_v21, %v1943_v52  ;;  %v5412_v22 = vrot.slane %v3808_v30, 2  ;;  %v5413_v50 = vrot.slane %v3808_v30, 4  ;;  %v5414_v8 = vrot.slane %v3808_v30, 6 }
 0x231   : > { %v1945_v41 = vsel %vm1572_vm6, %v1892_v42, %v1944_v58  ;;  %v2026_v47 = vperm.slane %v4077_v37, 0  ;;  %v5415_v15 = vrot.slane %v4077_v37, 2  ;;  %v5416_v63 = vrot.slane %v4077_v37, 4 }
 0x232   : > { %v2023_v14 = vperm.slane %v5412_v22, 0  ;;  %v2024_v23 = vperm.slane %v5413_v50, 0  ;;  %v2025_v38 = vperm.slane %v5414_v8, 0  ;;  %v1971_v35 = vsel %vm1640_vm7, 0.0, %v1945_v41 }
 0x233   : > { %v2027_v39 = vperm.slane %v5415_v15, 0  ;;  %v2028_v49 = vperm.slane %v5416_v63, 0  ;;  %v5417_v16 = vrot.slane %v4077_v37, 6  ;;  %v2073_v2 = vsel %vm1718_vm8, %v2015_v46, %v2014_v36 }
 0x234   : > { %v3321_v34 = vpack.i.bf16 %v1893_v29, %v1971_v35  ;;  %v2074_v42 = vsel %vm1562_vm1, %v2016_v55, %v2073_v2  ;;  %v2080_v30 = vsel %vm1718_vm8, %v2023_v14, %v2022_v61  ;;  %v1188_v43 = vrot.slane %v3882_v9, 4 }
 0x235   : > { %v2029_v21 = vperm.slane %v5417_v16, 0  ;;  %v2075_v52 = vsel %vm1564_vm2, %v2017_v25, %v2074_v42  ;;  %v2081_v58 = vsel %vm1562_vm1, %v2024_v23, %v2080_v30  ;;  %v1446_v22 = vrot.slane %v3717_v1, 2 }
 0x236   : > { %v1447_v50 = vrot.slane %v3717_v1, 4  ;;  %3322 = vrot.lane.b32.xlu1 %v3321_v34, %s3506_s18  ;;  %v2076_v37 = vsel %vm1566_vm3, %v2018_v48, %v2075_v52  ;;  %v2082_v46 = vsel %vm1564_vm2, %v2025_v38, %v2081_v58  ;;  %v4491_v36 = vsel %vm354_vm0, %v3865_v59, %v1188_v43 }
 0x237   : > { %v1448_v29 = vrot.slane %v3717_v1, 6  ;;  %v2077_v25 = vsel %vm1568_vm4, %v2019_v13, %v2076_v37  ;;  %v2083_v55 = vsel %vm1566_vm3, %v2026_v47, %v2082_v46  ;;  %v1449_v61 = vrot.slane %v4491_v36, 2 }
 0x238   : > { %v1450_v14 = vrot.slane %v4491_v36, 4  ;;  %v2078_v23 = vsel %vm1570_vm5, %v2020_v3, %v2077_v25  ;;  %v2084_v48 = vsel %vm1568_vm4, %v2027_v39, %v2083_v55  ;;  %v1451_v41 = vrot.slane %v4491_v36, 6 }
 0x239   : > { %v1650_v8 = vperm.slane %v5396_v11, 0  ;;  %v2079_v38 = vsel %vm1572_vm6, %v2021_v17, %v2078_v23  ;;  %v2085_v15 = vsel %vm1570_vm5, %v2028_v49, %v2084_v48  ;;  %v1651_v13 = vperm.slane %v4164_v33, 0 }
 0x23a   : > { %v1652_v47 = vperm.slane %v4170_v62, 0  ;;  %v1186_v35 = vrot.slane %v3865_v59, 4  ;;  %v2086_v63 = vsel %vm1572_vm6, %v2029_v21, %v2085_v15  ;;  %v1653_v3 = vperm.slane %v4175_v5, 0 }
 0x23b   : > { %v1655_v39 = vperm.slane %v1446_v22, 0  ;;  %v3331_v16 = vpack.i.bf16 %v2086_v63, %v2079_v38  ;;  %v1654_v11 = vperm.slane %v3717_v1, 0  ;;  %v1656_v17 = vperm.slane %v1447_v50, 0 }
 0x23c   : > { %v1657_v33 = vperm.slane %v1448_v29, 0  ;;  %v1658_v62 = vperm.slane %v4491_v36, 0  ;;  %v1659_v59 = vperm.slane %v1449_v61, 0  ;;  %v1660_v5 = vperm.slane %v1450_v14, 0 }
 0x23d   : > { %v1719_v49 = vsel %vm1718_vm8, %v1651_v13, %v1650_v8  ;;  %v1661_v21 = vperm.slane %v1451_v41, 0  ;;  %v1726_v34 = vsel %vm1718_vm8, %v1655_v39, %v1654_v11  ;;  %v2031_v42 = vperm.slane %v1840_v31, 0 }
 0x23e   : > { %v1720_v2 = vsel %vm1562_vm1, %v1652_v47, %v1719_v49  ;;  %3332 = vrot.lane.b32.xlu1 %v3331_v16, %s3509_s5  ;;  %v1727_v43 = vsel %vm1562_vm1, %v1656_v17, %v1726_v34  ;;  %v2030_v52 = vperm.slane %v3799_v20, 0  ;;  %v2032_v58 = vperm.slane %v1841_v40, 0 }
 0x23f   : > { %v4530_v30 = vsel %vm1564_vm2, %v1653_v3, %v1720_v2  ;;  %v1728_v46 = vsel %vm1564_vm2, %v1657_v33, %v1727_v43  ;;  %v2033_v31 = vperm.slane %v1842_v32, 0  ;;  %v2034_v25 = vperm.slane %v4415_v18, 0 }
 0x240   : > { %v1722_v37 = vsel %vm1566_vm3, %v1650_v8, %v4530_v30  ;;  %v1729_v23 = vsel %vm1566_vm3, %v1658_v62, %v1728_v46  ;;  %v2035_v48 = vperm.slane %v1843_v57, 0  ;;  %v2036_v40 = vperm.slane %v1844_v51, 0 }
 0x241   : > { %v1723_v55 = vsel %vm1568_vm4, %v1651_v13, %v1722_v37  ;;  %v1730_v8 = vsel %vm1568_vm4, %v1659_v59, %v1729_v23  ;;  %v2087_v15 = vsel %vm1718_vm8, %v2031_v42, %v2030_v52  ;;  %v4553_v20 = vsel %vm354_vm0, %v1186_v35, %v3882_v9 }
 0x242   : > { %v1724_v38 = vsel %vm1570_vm5, %v1652_v47, %v1723_v55  ;;  %v1731_v13 = vsel %vm1570_vm5, %v1660_v5, %v1730_v8  ;;  %v2088_v63 = vsel %vm1562_vm1, %v2032_v58, %v2087_v15  ;;  %v1798_v57 = vrot.slane %v3730_v7, 2 }
 0x243   : > { %v1725_v32 = vsel %vm1572_vm6, %v1653_v3, %v1724_v38  ;;  %v1732_v51 = vsel %vm1572_vm6, %v1661_v21, %v1731_v13  ;;  %v2089_v47 = vsel %vm1564_vm2, %v2033_v31, %v2088_v63  ;;  %v1799_v39 = vrot.slane %v3730_v7, 4 }
 0x244   : > { %v1800_v16 = vrot.slane %v3730_v7, 6  ;;  %v3356_v11 = vpack.i.bf16 %v1732_v51, %v1725_v32  ;;  %v2090_v9 = vsel %vm1566_vm3, %v2034_v25, %v2089_v47  ;;  %v1801_v35 = vrot.slane %v4553_v20, 2 }
 0x245   : > { %v2037_v3 = vperm.slane %v1845_v28, 0  ;;  %v2091_v17 = vsel %vm1568_vm4, %v2035_v48, %v2090_v9  ;;  %v1802_v33 = vrot.slane %v4553_v20, 4  ;;  %v1803_v62 = vrot.slane %v4553_v20, 6 }
 0x246   : > { %3357 = vrot.lane.b32.xlu2 %v3356_v11, %s3507_s25  ;;  %v2092_v59 = vsel %vm1570_vm5, %v2036_v40, %v2091_v17  ;;  %v1974_v5 = vperm.slane %v3730_v7, 0  ;;  %v1975_v49 = vperm.slane %v1798_v57, 0  ;;  %v1976_v21 = vperm.slane %v1799_v39, 0  ;;  %s215_s25 = scalar_lea.vmem %s5310_s4, %s5475_s19 }
 0x247   : > { %v2093_v2 = vsel %vm1572_vm6, %v2037_v3, %v2092_v59  ;;  %v1977_v34 = vperm.slane %v1800_v16, 0  ;;  %v1978_v18 = vperm.slane %v4553_v20, 0  ;;  %v1979_v28 = vperm.slane %v1801_v35, 0 }
 0x248   : > { %v3346_v42 = vpack.i.bf16 %v1725_v32, %v2093_v2  ;;  %v1982_v43 = vperm.slane %v3722_v4, 0  ;;  %v1983_v52 = vperm.slane %v1804_v24, 0  ;;  %v5418_v58 = vrot.slane %v3722_v4, 4 }
 0x249   : > { %v1980_v46 = vperm.slane %v1802_v33, 0  ;;  %v1981_v31 = vperm.slane %v1803_v62, 0  ;;  %v5419_v25 = vrot.slane %v3722_v4, 6  ;;  %v1986_v23 = vperm.slane %v4291_v56, 0 }
 0x24a   : > { %v1984_v37 = vperm.slane %v5418_v58, 0  ;;  %3347 = vrot.lane.b32.xlu1 %v3346_v42, %s3509_s5  ;;  %v5420_v48 = vrot.slane %v4291_v56, 2  ;;  %v5421_v38 = vrot.slane %v4291_v56, 4  ;;  %v2038_v24 = vsel %vm1718_vm8, %v1975_v49, %v1974_v5 }
 0x24b   : > { %v1985_v55 = vperm.slane %v5419_v25, 0  ;;  %v2045_v15 = vsel %vm1718_vm8, %v1983_v52, %v1982_v43  ;;  %v2039_v32 = vsel %vm1562_vm1, %v1976_v21, %v2038_v24  ;;  %v1847_v4 = vperm.slane %v1798_v57, 1 }
 0x24c   : > { %v1987_v40 = vperm.slane %v5420_v48, 0  ;;  %v1988_v8 = vperm.slane %v5421_v38, 0  ;;  %v2046_v13 = vsel %vm1562_vm1, %v1984_v37, %v2045_v15  ;;  %v1848_v63 = vperm.slane %v1799_v39, 1 }
 0x24d   : > { %v5422_v51 = vrot.slane %v4291_v56, 6  ;;  %v2040_v11 = vsel %vm1564_vm2, %v1977_v34, %v2039_v32  ;;  %v2047_v9 = vsel %vm1564_vm2, %v1985_v55, %v2046_v13  ;;  %v1846_v3 = vperm.slane %v3730_v7, 1 }
 0x24e   : > { %v2041_v17 = vsel %vm1566_vm3, %v1978_v18, %v2040_v11  ;;  %v2048_v59 = vsel %vm1566_vm3, %v1986_v23, %v2047_v9  ;;  %v1849_v5 = vperm.slane %v1800_v16, 1  ;;  %v1850_v49 = vperm.slane %v4553_v20, 1 }
 0x24f   : > { %v1989_v47 = vperm.slane %v5422_v51, 0  ;;  %v2042_v21 = vsel %vm1568_vm4, %v1979_v28, %v2041_v17  ;;  %v2049_v57 = vsel %vm1568_vm4, %v1987_v40, %v2048_v59  ;;  %v1851_v39 = vperm.slane %v1801_v35, 1  ;;  %v5424_v40 = vld [vmem:[#allocation5_spill] sm:$0xff]  ;;  %v5428_v59 = vld [vmem:[#allocation7_spill] sm:$0xff] }
 0x250   : > { %v1910_v56 = vsel %vm1562_vm1, %v1847_v4, %v1846_v3  ;;  %v2043_v2 = vsel %vm1570_vm5, %v1980_v46, %v2042_v21  ;;  %v2050_v34 = vsel %vm1570_vm5, %v1988_v8, %v2049_v57  ;;  %v1852_v42 = vperm.slane %v1802_v33, 1  ;;  %v4615_v46 = vpop.permute.xlu2 %3287 }
 0x251   : > { %v1911_v7 = vsel %vm1564_vm2, %v1848_v63, %v1910_v56  ;;  %v2044_v18 = vsel %vm1572_vm6, %v1981_v31, %v2043_v2  ;;  %v2051_v16 = vsel %vm1572_vm6, %v1989_v47, %v2050_v34  ;;  %v1853_v52 = vperm.slane %v1803_v62, 1  ;;  %v5430_v56 = vld [vmem:[#allocation9_spill] sm:$0xff] }
 0x252   : > { %v1912_v20 = vsel %vm1566_vm3, %v1849_v5, %v1911_v7  ;;  %v3371_v43 = vpack.i.bf16 %v2051_v16, %v2044_v18  ;;  %v1500_v25 = vperm.slane %v1447_v50, 1  ;;  %v5423_v55 = vrot.slane %v3714_v60, 2 }
 0x253   : > { %v1913_v28 = vsel %vm1568_vm4, %v1850_v49, %v1912_v20  ;;  %v1498_v48 = vperm.slane %v3717_v1, 1  ;;  %v1499_v62 = vperm.slane %v1446_v22, 1  ;;  %v5425_v38 = vrot.slane %v5424_v40, 2 }
 0x254   : > { %v1914_v35 = vsel %vm1570_vm5, %v1851_v39, %v1913_v28  ;;  %3372 = vrot.lane.b32.xlu2 %v3371_v43, %s3509_s5  ;;  %v1515_v23 = vperm.slane %v5423_v55, 1  ;;  %v1502_v24 = vperm.slane %v4491_v36, 1  ;;  %v1514_v15 = vperm.slane %v3714_v60, 1 }
 0x255   : > { %v1915_v58 = vsel %vm1572_vm6, %v1852_v42, %v1914_v35  ;;  %v1507_v8 = vperm.slane %v5425_v38, 1  ;;  %v1501_v32 = vperm.slane %v1448_v29, 1  ;;  %v1503_v50 = vperm.slane %v1449_v61, 1  ;;  %v3293_v38 = vpop.permute.xlu0 %3292 }
 0x256   : > { %v1966_v33 = vsel %vm1640_vm7, 0.0, %v1915_v58  ;;  %v1574_v13 = vsel %vm1562_vm1, %v1499_v62, %v1498_v48  ;;  %v5426_v4 = vrot.slane %v3714_v60, 4  ;;  %v1506_v22 = vperm.slane %v5424_v40, 1 }
 0x257   : > { %v3361_v37 = vpack.i.bf16 %v1853_v52, %v1966_v33  ;;  %v1504_v51 = vperm.slane %v1450_v14, 1  ;;  %v1575_v47 = vsel %vm1564_vm2, %v1500_v25, %v1574_v13  ;;  %v1586_v11 = vsel %vm1562_vm1, %v1515_v23, %v1514_v15 }
 0x258   : > { %v1516_v63 = vperm.slane %v5426_v4, 1  ;;  %v5427_v1 = vrot.slane %v5424_v40, 4  ;;  %v1576_v9 = vsel %vm1566_vm3, %v1501_v32, %v1575_v47  ;;  %v1580_v61 = vsel %vm1562_vm1, %v1507_v8, %v1506_v22  ;;  %v4653_v39 = vpop.permute.xlu2 %3307  ;;  %v5436_v4 = vld [vmem:[#allocation6_spill] sm:$0xff] }
 0x259   : > { %3362 = vrot.lane.b32.xlu1 %v3361_v37, %s3506_s18  ;;  %v3283_v31 = vpop.permute.xlu1 %3282  ;;  %v1577_v3 = vsel %vm1568_vm4, %v1502_v24, %v1576_v9  ;;  %v1518_v5 = vperm.slane %v5428_v59, 1  ;;  %v5429_v21 = vrot.slane %v3714_v60, 6  ;;  %v1510_v2 = vperm.slane %v5430_v56, 1 }
 0x25a   : > { %v1508_v29 = vperm.slane %v5427_v1, 1  ;;  %v1578_v17 = vsel %vm1570_vm5, %v1503_v50, %v1577_v3  ;;  %v1587_v49 = vsel %vm1564_vm2, %v1516_v63, %v1586_v11  ;;  %v5431_v42 = vrot.slane %v5424_v40, 6 }
 0x25b   : > { %v4649_v14 = vsel %vm1572_vm6, %v1504_v51, %v1578_v17  ;;  %v1517_v57 = vperm.slane %v5429_v21, 1  ;;  %v5432_v16 = vrot.slane %v5428_v59, 2  ;;  %v5433_v60 = vrot.slane %v5430_v56, 2 }
 0x25c   : > { %v1581_v34 = vsel %vm1564_vm2, %v1508_v29, %v1580_v61  ;;  %v1509_v7 = vperm.slane %v5431_v42, 1  ;;  %v5434_v33 = vrot.slane %v5428_v59, 4  ;;  %v5435_v55 = vrot.slane %v5430_v56, 4 }
 0x25d   : > { %v1519_v20 = vperm.slane %v5432_v16, 1  ;;  %v1588_v43 = vsel %vm1566_vm3, %v1517_v57, %v1587_v49  ;;  %v1511_v35 = vperm.slane %v5433_v60, 1  ;;  %v3289_v62 = vunpack.i.l.bf16 %v4615_v46  ;;  %v5442_v60 = vld [vmem:[#allocation8_spill] sm:$0xff] }
 0x25e   : > { %v1589_v28 = vsel %vm1568_vm4, %v1518_v5, %v1588_v43  ;;  %v1582_v52 = vsel %vm1566_vm3, %v1509_v7, %v1581_v34  ;;  %v1520_v37 = vperm.slane %v5434_v33, 1  ;;  %v1512_v23 = vperm.slane %v5435_v55, 1 }
 0x25f   : > { %v1583_v58 = vsel %vm1568_vm4, %v1510_v2, %v1582_v52  ;;  %v1590_v25 = vsel %vm1570_vm5, %v1519_v20, %v1589_v28  ;;  %v3285_v24 = vunpack.i.h.bf16 %v3283_v31  ;;  %v1522_v63 = vperm.slane %v5436_v4, 1 }
 0x260   : > { %v1584_v48 = vsel %vm1570_vm5, %v1511_v35, %v1583_v58  ;;  %v1591_v40 = vsel %vm1572_vm6, %v1520_v37, %v1590_v25  ;;  %v5437_v22 = vrot.slane %v5436_v4, 2  ;;  %v4684_v1 = vunpack.i.l.bf16 %v3283_v31  ;;  %v4710_v58 = vpop.permute.xlu0 %3337 }
 0x261   : > { %v1585_v15 = vsel %vm1572_vm6, %v1512_v23, %v1584_v48  ;;  %v1644_v13 = vsel %vm1640_vm7, 0.0, %v1591_v40  ;;  %v3294_v61 = vunpack.i.l.bf16 %v3293_v38  ;;  %v5438_v5 = vrot.slane %v5436_v4, 4 }
 0x262   : > { %v1523_v51 = vperm.slane %v5437_v22, 1  ;;  %v2224_v47 = vsel %vm2217_vm9, %v1644_v13, %v3289_v62  ;;  %v1643_v11 = vsel %vm1640_vm7, 0.0, %v1585_v15  ;;  %v3309_v21 = vunpack.i.l.bf16 %v4653_v39 }
 0x263   : > { %v2222_v29 = vsel %vm2217_vm9, %v1643_v11, %v3285_v24  ;;  %v1524_v49 = vperm.slane %v5438_v5, 1  ;;  %v5439_v57 = vrot.slane %v5428_v59, 6  ;;  %v5440_v7 = vrot.slane %v5430_v56, 6 }
 0x264   : > { %v1592_v31 = vsel %vm1562_vm1, %v1523_v51, %v1522_v63  ;;  %v2241_v42 = vsel %vm2236_vm10, %v2222_v29, %v3294_v61  ;;  %v5441_v59 = vrot.slane %v5436_v4, 6  ;;  %v1526_v35 = vperm.slane %v5442_v60, 1 }
 0x265   : > { %v1521_v2 = vperm.slane %v5439_v57, 1  ;;  %v1513_v16 = vperm.slane %v5440_v7, 1  ;;  %v3295_v52 = vunpack.i.h.bf16 %v3293_v38  ;;  %v1593_v33 = vsel %vm1564_vm2, %v1524_v49, %v1592_v31 }
 0x266   : > { %v1525_v28 = vperm.slane %v5441_v59, 1  ;;  %v5443_v24 = vrot.slane %v5442_v60, 2  ;;  %v5444_v63 = vrot.slane %v3784_v19, 2  ;;  %v1530_v61 = vperm.slane %v3784_v19, 1 }
 0x267   : > { %v4675_v8 = vpop.permute.xlu2 %3317  ;;  %v2223_v25 = vsel %vm2217_vm9, %v1513_v16, %v4684_v1  ;;  %v5447_v5 = vrot.slane %v3784_v19, 4  ;;  %v5448_v7 = vrot.slane %v3777_v10, 4  ;;  %v5449_v59 = vrot.slane %v3784_v19, 6 }
 0x268   : > { %v2242_v48 = vsel %vm2236_vm10, %v2223_v25, %v3295_v52  ;;  %v1527_v15 = vperm.slane %v5443_v24, 1  ;;  %v1531_v22 = vperm.slane %v5444_v63, 1  ;;  %v3310_v52 = vunpack.i.h.bf16 %v4653_v39 }
 0x269   : > { %v1532_v49 = vperm.slane %v5447_v5, 1  ;;  %v1540_v16 = vperm.slane %v5448_v7, 1  ;;  %v5450_v25 = vrot.slane %v5442_v60, 6  ;;  %v1542_v24 = vperm.slane %v4190_v44, 1 }
 0x26a   : > { %v1598_v57 = vsel %vm1562_vm1, %v1531_v22, %v1530_v61  ;;  %v5453_v22 = vrot.slane %v4190_v44, 2  ;;  %vm2455_vm0 = vcmask 523264  }
 0x26e   : > { %v3298_v18 = vpop.permute.xlu1 %3297 }
 0x26f   : > { %v3299_v32 = vunpack.i.l.bf16 %v3298_v18  ;;  %v3300_v3 = vunpack.i.h.bf16 %v3298_v18  ;;  %v2225_v18 = vsel %vm2217_vm9, %v1521_v2, %v4684_v1 }
 0x271   : > { %v2243_v17 = vsel %vm2236_vm10, %v2224_v47, %v3299_v32  ;;  %v2244_v56 = vsel %vm2236_vm10, %v2225_v18, %v3300_v3  ;;  %v1594_v32 = vsel %vm1566_vm3, %v1525_v28, %v1593_v33  ;;  %v5445_v47 = vrot.slane %v5442_v60, 4 }
 0x272   : > { %v4702_v20 = vsel %vm2255_vm11, %v2243_v17, %v3309_v21  ;;  %v1595_v4 = vsel %vm1568_vm4, %v1526_v35, %v1594_v32  ;;  %v5446_v3 = vrot.slane %v3777_v10, 2  ;;  %v1538_v21 = vperm.slane %v3777_v10, 1 }
 0x273   : > { %v2308_v62 = vrot.slane %v4702_v20, 1  ;;  %v1528_v11 = vperm.slane %v5445_v47, 1  ;;  %v4750_v2 = vpop.permute.xlu0 %3352  ;;  %v1533_v28 = vperm.slane %v5449_v59, 1  ;;  %v1599_v33 = vsel %vm1564_vm2, %v1532_v49, %v1598_v57 }
 0x274   : > { %v1539_v17 = vperm.slane %v5446_v3, 1  ;;  %v5452_v60 = vrot.slane %v3777_v10, 6  ;;  %v1543_v47 = vperm.slane %v5453_v22, 1  ;;  %v5454_v49 = vrot.slane %v3796_v26, 2 }
 0x275   : > { %v5455_v57 = vrot.slane %v4201_v45, 4 }
 0x276   : > { %v1604_v35 = vsel %vm1562_vm1, %v1539_v17, %v1538_v21  ;;  %v1541_v32 = vperm.slane %v5452_v60, 1  ;;  %v1547_v21 = vperm.slane %v5454_v49, 1  ;;  %v5460_v60 = vrot.slane %v3780_v12, 4 }
 0x277   : > { %v1605_v39 = vsel %vm1564_vm2, %v1540_v16, %v1604_v35  ;;  %v5456_v16 = vrot.slane %v4190_v44, 4  ;;  %v1546_v35 = vperm.slane %v3796_v26, 1 }
 0x278   : > { %v1606_v10 = vsel %vm1566_vm3, %v1541_v32, %v1605_v39  ;;  %v1556_v32 = vperm.slane %v5460_v60, 1 }
 0x279   : > { %v1607_v5 = vsel %vm1568_vm4, %v1542_v24, %v1606_v10  ;;  %v1544_v59 = vperm.slane %v5456_v16, 1  ;;  %v5459_v24 = vrot.slane %v3796_v26, 6  ;;  %v5464_v16 = vrot.slane %v4201_v45, 6 }
 0x27b   : > { %v1549_v39 = vperm.slane %v5459_v24, 1 }
 0x27e   : > { %v4714_v37 = vpop.permute.xlu2 %3327 }
 0x283   : > { %v3303_v50 = vpop.permute.xlu1 %3302 }
 0x284   : > { %v3305_v9 = vunpack.i.h.bf16 %v3303_v50  ;;  %v4693_v34 = vunpack.i.l.bf16 %v3303_v50 }
 0x286   : > { %v4705_v43 = vsel %vm2255_vm11, %v2241_v42, %v3305_v9  ;;  %v2263_v55 = vsel %vm2255_vm11, %v2244_v56, %v4693_v34  ;;  %v2261_v38 = vsel %vm2255_vm11, %v2242_v48, %v4693_v34  ;;  %v1596_v9 = vsel %vm1570_vm5, %v1527_v15, %v1595_v4 }
 0x287   : > { %v2305_v23 = vrot.slane %v4705_v43, 1  ;;  %v2309_v40 = vrot.slane %v2263_v55, 1  ;;  %v2306_v50 = vrot.slane %v2261_v38, 1  ;;  %v1597_v31 = vsel %vm1572_vm6, %v1528_v11, %v1596_v9 }
 0x288   : > { %v3290_v42 = vunpack.i.h.bf16 %v4615_v46  ;;  %v1534_v56 = vperm.slane %v4201_v45, 1  ;;  %v1529_v55 = vperm.slane %v5450_v25, 1  ;;  %v5451_v48 = vrot.slane %v4201_v45, 2 }
 0x289   : > { %v4729_v13 = vsel %vm2298_vm12, %v2308_v62, %v2309_v40  ;;  %v4735_v51 = vsel %vm2298_vm12, %v2305_v23, %v2306_v50  ;;  %v4756_v18 = vpop.permute.xlu2 %3342  ;;  %v1645_v23 = vsel %vm1640_vm7, 0.0, %v1597_v31  ;;  %v1600_v50 = vsel %vm1566_vm3, %v1533_v28, %v1599_v33 }
 0x28a   : > { %v3376_v29 = vpack.i.bf16 %v4729_v13, %v4735_v51  ;;  %v1535_v62 = vperm.slane %v5451_v48, 1  ;;  %v2226_v38 = vsel %vm2217_vm9, %v1645_v23, %v3290_v42  ;;  %v2227_v15 = vsel %vm2217_vm9, %v1529_v55, %v4684_v1  ;;  %v3368_v42 = vpop.permute.xlu0 %3367 }
 0x28b   : > { %v1601_v11 = vsel %vm1568_vm4, %v1534_v56, %v1600_v50  ;;  %v1536_v31 = vperm.slane %v5455_v57, 1  ;;  %v1608_v33 = vsel %vm1570_vm5, %v1543_v47, %v1607_v5  ;;  %v5457_v25 = vrot.slane %v3796_v26, 4 }
 0x28c   : > { %3377 = vrot.lane.b32.xlu1 %v3376_v29, %s3510_s6  ;;  %v1602_v28 = vsel %vm1570_vm5, %v1535_v62, %v1601_v11  ;;  %v1610_v48 = vsel %vm1562_vm1, %v1547_v21, %v1546_v35  ;;  %v5461_v26 = vrot.slane %v4324_v27, 2 }
 0x28d   : > { %v1548_v55 = vperm.slane %v5457_v25, 1  ;;  %v1603_v62 = vsel %vm1572_vm6, %v1536_v31, %v1602_v28  ;;  %v1642_v31 = vsel %vm1640_vm7, 0.0, %v4649_v14  ;;  %v3319_v28 = vunpack.i.l.bf16 %v4675_v8 }
 0x28e   : > { %v1646_v22 = vsel %vm1640_vm7, 0.0, %v1603_v62  ;;  %v1551_v47 = vperm.slane %v5461_v26, 1  ;;  %v3339_v14 = vunpack.i.l.bf16 %v4710_v58  ;;  %v5466_v62 = vrot.slane %v4330_v54, 4 }
 0x28f   : > { %v1611_v50 = vsel %vm1564_vm2, %v1548_v55, %v1610_v48  ;;  %v5465_v48 = vrot.slane %v4330_v54, 2  ;;  %v3340_v26 = vunpack.i.h.bf16 %v4710_v58 }
 0x290   : > { %v1612_v21 = vsel %vm1566_vm3, %v1549_v39, %v1611_v50  ;;  %v2228_v39 = vsel %vm2217_vm9, %v1646_v22, %v3319_v28 }
 0x29a   : > { %v3313_v46 = vpop.permute.xlu1 %3312 }
 0x29b   : > { %v3315_v40 = vunpack.i.h.bf16 %v3313_v46  ;;  %v3314_v19 = vunpack.i.l.bf16 %v3313_v46  ;;  %v5458_v46 = vrot.slane %v3780_v12, 2 }
 0x29d   : > { %v2245_v4 = vsel %vm2236_vm10, %v2226_v38, %v3314_v19  ;;  %v2246_v63 = vsel %vm2236_vm10, %v2227_v15, %v3315_v40  ;;  %v1555_v23 = vperm.slane %v5458_v46, 1  ;;  %v3370_v40 = vunpack.i.h.bf16 %v3368_v42 }
 0x29e   : > { %v2265_v29 = vsel %vm2255_vm11, %v2246_v63, %v4693_v34  ;;  %v4785_v9 = vsel %vm2255_vm11, %v2245_v4, %v3310_v52  ;;  %v1554_v19 = vperm.slane %v3780_v12, 1  ;;  %v1609_v38 = vsel %vm1572_vm6, %v1544_v59, %v1608_v33 }
 0x29f   : > { %v2312_v61 = vrot.slane %v2265_v29, 1  ;;  %v2311_v3 = vrot.slane %v4785_v9, 1  ;;  %v3381_v17 = vpack.i.bf16 %v4785_v9, %v4702_v20  ;;  %v1550_v15 = vperm.slane %v4324_v27, 1 }
 0x2a0   : > { %v4804_v52 = vpop.permute.xlu2 %3357  ;;  %v1616_v4 = vsel %vm1562_vm1, %v1555_v23, %v1554_v19  ;;  %v3369_v29 = vunpack.i.l.bf16 %v3368_v42  ;;  %v1647_v10 = vsel %vm1640_vm7, 0.0, %v1609_v38  ;;  %v1537_v59 = vperm.slane %v5464_v16, 1 }
 0x2a1   : > { %3382 = vrot.lane.b32.xlu0 %v3381_v17, %s3511_s7  ;;  %v4798_v7 = vsel %vm2298_vm12, %v2311_v3, %v2312_v61  ;;  %v3360_v63 = vunpack.i.h.bf16 %v4804_v52  ;;  %v5462_v61 = vrot.slane %v4324_v27, 4  ;;  %v5463_v17 = vrot.slane %v3780_v12, 6 }
 0x2a2   : > { %v3396_v56 = vpack.i.bf16 %v4798_v7, %v4729_v13  ;;  %v1505_v13 = vperm.slane %v1451_v41, 1  ;;  %v1617_v57 = vsel %vm1564_vm2, %v1556_v32, %v1616_v4  ;;  %v3320_v42 = vunpack.i.h.bf16 %v4675_v8 }
 0x2a3   : > { %v1552_v3 = vperm.slane %v5462_v61, 1  ;;  %v1557_v5 = vperm.slane %v5463_v17, 1  ;;  %v2220_v35 = vsel %vm2217_vm9, %v1642_v31, %v3360_v63  ;;  %v1613_v33 = vsel %vm1568_vm4, %v1550_v15, %v1612_v21 }
 0x2a4   : > { %3397 = vrot.lane.b32.xlu2 %v3396_v56, %s3512_s8  ;;  %v2221_v36 = vsel %vm2217_vm9, %v1505_v13, %v4684_v1  ;;  %v1558_v56 = vperm.slane %v4330_v54, 1  ;;  %v2239_v25 = vsel %vm2236_vm10, %v2220_v35, %v3369_v29  ;;  %v2229_v45 = vsel %vm2217_vm9, %v1537_v59, %v4684_v1 }
 0x2a5   : > { %v2240_v11 = vsel %vm2236_vm10, %v2221_v36, %v3370_v40  ;;  %v1559_v40 = vperm.slane %v5465_v48, 1  ;;  %v1560_v19 = vperm.slane %v5466_v62, 1  ;;  %v1618_v13 = vsel %vm1566_vm3, %v1557_v5, %v1617_v57 }
 0x2a6   : > { %v2259_v12 = vsel %vm2255_vm11, %v2240_v11, %v4693_v34  ;;  %v2230_v24 = vsel %vm2217_vm9, %v1647_v10, %v3320_v42  ;;  %v1614_v15 = vsel %vm1570_vm5, %v1551_v47, %v1613_v33  ;;  %v5467_v47 = vrot.slane %v4190_v44, 6 }
 0x2a7   : > { %v2303_v38 = vrot.slane %v2259_v12, 1  ;;  %v2249_v11 = vsel %vm2236_vm10, %v2230_v24, %v3339_v14  ;;  %v1615_v59 = vsel %vm1572_vm6, %v1552_v3, %v1614_v15  ;;  %v3330_v12 = vunpack.i.h.bf16 %v4714_v37 }
 0x2a8   : > { %v3323_v41 = vpop.permute.xlu1 %3322  ;;  %v1545_v29 = vperm.slane %v5467_v47, 1  ;;  %v3354_v3 = vunpack.i.l.bf16 %v4750_v2 }
 0x2a9   : > { %v3325_v49 = vunpack.i.h.bf16 %v3323_v41  ;;  %v3324_v46 = vunpack.i.l.bf16 %v3323_v41  ;;  %v1619_v41 = vsel %vm1568_vm4, %v1558_v56, %v1618_v13  ;;  %v3345_v56 = vunpack.i.h.bf16 %v4756_v18 }
 0x2aa   : > { %v1620_v44 = vsel %vm1570_vm5, %v1559_v40, %v1619_v41  ;;  %v2231_v57 = vsel %vm2217_vm9, %v1545_v29, %v4684_v1  ;;  %v5469_v40 = vrot.slane %v4330_v54, 6  ;;  %vm2600_vm4 = vcmask 1043456  }
 0x2ab   : > { %v2248_v23 = vsel %vm2236_vm10, %v2229_v45, %v3325_v49  ;;  %v2247_v22 = vsel %vm2236_vm10, %v2228_v39, %v3324_v46  ;;  %v2250_v31 = vsel %vm2236_vm10, %v2231_v57, %v3340_v26  ;;  %v1621_v35 = vsel %vm1572_vm6, %v1560_v19, %v1620_v44 }
 0x2ac   : > { %v2267_v50 = vsel %vm2255_vm11, %v2248_v23, %v4693_v34  ;;  %v2269_v28 = vsel %vm2255_vm11, %v2250_v31, %v4693_v34  ;;  %v5468_v45 = vrot.slane %v4324_v27, 6  ;;  %v1648_v46 = vsel %vm1640_vm7, 0.0, %v1615_v59 }
 0x2ad   : > { %v2315_v5 = vrot.slane %v2267_v50, 1  ;;  %v1649_v23 = vsel %vm1640_vm7, 0.0, %v1621_v35  ;;  %v3355_v19 = vunpack.i.h.bf16 %v4750_v2  ;;  %v2219_v35 = vsel %vm2217_vm9, %v4183_v53, %v4684_v1 }
 0x2ae   : > { %v4853_v55 = vpop.permute.xlu2 %3372  ;;  %v1553_v14 = vperm.slane %v5468_v45, 1  ;;  %v2234_v27 = vsel %vm2217_vm9, %v1649_v23, %v3330_v12  ;;  %vm2763_vm5 = vcmask 195584  }
 0x2af   : > { %v3375_v8 = vunpack.i.h.bf16 %v4853_v55  ;;  %v2253_v54 = vsel %vm2236_vm10, %v2234_v27, %v3354_v3 }
 0x2b0   : > { %v3333_v60 = vpop.permute.xlu1 %3332  ;;  %v2233_v48 = vsel %vm2217_vm9, %v1553_v14, %v4684_v1  ;;  %v3083_v14 = vld [vmem:[%s5307_s1 + $0x8] sm:$0xff] }
 0x2b1   : > { %v4869_v32 = vsel %vm2255_vm11, %v2239_v25, %v3375_v8  ;;  %v3335_v4 = vunpack.i.h.bf16 %v3333_v60  ;;  %v3334_v63 = vunpack.i.l.bf16 %v3333_v60  ;;  %v3329_v25 = vunpack.i.l.bf16 %v4714_v37 }
 0x2b2   : > { %v2302_v36 = vrot.slane %v4869_v32, 1  ;;  %v2318_v8 = vrot.slane %v2269_v28, 1  ;;  %v1561_v37 = vperm.slane %v5469_v40, 1  ;;  %v2252_v62 = vsel %vm2236_vm10, %v2233_v48, %v3345_v56 }
 0x2b3   : > { %v4881_v10 = vsel %vm2255_vm11, %v2247_v22, %v3334_v63  ;;  %v4884_v61 = vsel %vm2255_vm11, %v2249_v11, %v3335_v4  ;;  %v2271_v15 = vsel %vm2255_vm11, %v2252_v62, %v4693_v34  ;;  %v3421_v44 = vpack.i.bf16 %v4705_v43, %v4869_v32 }
 0x2b4   : > { %v4887_v17 = vsel %vm2298_vm12, %v2302_v36, %v2303_v38  ;;  %v3386_v58 = vpack.i.bf16 %v4884_v61, %v4881_v10  ;;  %v2314_v49 = vrot.slane %v4881_v10, 1  ;;  %v2317_v33 = vrot.slane %v4884_v61, 1 }
 0x2b5   : > { %v3431_v21 = vpack.i.bf16 %v4735_v51, %v4887_v17  ;;  %v2232_v38 = vsel %vm2217_vm9, %v1648_v46, %v3329_v25  ;;  %v2235_v50 = vsel %vm2217_vm9, %v1561_v37, %v4684_v1  ;;  %v2321_v11 = vrot.slane %v2271_v15, 1  ;;  %v3085_v1 = vld [vmem:[%s5307_s1 + $0x18] sm:$0xff]  ;;  %v3082_v51 = vld [vmem:[%s5307_s1] sm:$0xff] }
 0x2b6   : > { %3387 = vrot.lane.b32.xlu0 %v3386_v58, %s3511_s7  ;;  %v2316_v16 = vsel %vm2298_vm12, %v2314_v49, %v2315_v5  ;;  %v2319_v13 = vsel %vm2298_vm12, %v2317_v33, %v2318_v8  ;;  %v2254_v36 = vsel %vm2236_vm10, %v2235_v50, %v3355_v19  ;;  %v3359_v49 = vunpack.i.l.bf16 %v4804_v52  ;;  %3094 = vmatpush.bf16.msra.mxu2 %v3085_v1 }
 0x2b7   : > { %v3401_v42 = vpack.i.bf16 %v2316_v16, %v4798_v7  ;;  %v3344_v7 = vunpack.i.l.bf16 %v4756_v18  ;;  %v3411_v63 = vpack.i.bf16 %v2319_v13, %v2316_v16  ;;  %v2273_v29 = vsel %vm2255_vm11, %v2254_v36, %v4693_v34  ;;  %3095 = vmatpush.bf16.msra.mxu3 %v3085_v1  ;;  %2472 = vmatpush.bf16.msra.mxu0 %v3085_v1 }
 0x2b8   : > { %v2374_v58 = vrot.slane %v2273_v29, 1  ;;  %v3374_v28 = vunpack.i.l.bf16 %v4853_v55 }
 0x2b9   : > { %3402 = vrot.lane.b32.xlu1 %v3401_v42, %s3510_s6  ;;  %v2251_v60 = vsel %vm2236_vm10, %v2232_v38, %v3344_v7  ;;  %v2218_v42 = vsel %vm2217_vm9, %v4226_v0, %v3359_v49 }
 0x2bc   : > { %v3348_v18 = vpop.permute.xlu1 %3347 }
 0x2bd   : > { %v3350_v24 = vunpack.i.h.bf16 %v3348_v18  ;;  %v3349_v39 = vunpack.i.l.bf16 %v3348_v18 }
 0x2bf   : > { %v4932_v4 = vsel %vm2255_vm11, %v2251_v60, %v3349_v39  ;;  %v2272_v2 = vsel %vm2255_vm11, %v2253_v54, %v3350_v24 }
 0x2c0   : > { %v3391_v41 = vpack.i.bf16 %v2272_v2, %v4932_v4  ;;  %v2320_v26 = vrot.slane %v4932_v4, 1  ;;  %v2373_v5 = vrot.slane %v2272_v2, 1 }
 0x2c1   : > { %3412 = vrot.lane.b32.xlu1 %v3411_v63, %s3512_s8 }
 0x2c2   : > { %3392 = vrot.lane.b32.xlu0 %v3391_v41, %s3511_s7  ;;  %v2322_v22 = vsel %vm2298_vm12, %v2320_v26, %v2321_v11  ;;  %v2375_v57 = vsel %vm2298_vm12, %v2373_v5, %v2374_v58 }
 0x2c3   : > { %v3406_v47 = vpack.i.bf16 %v2322_v22, %v2319_v13  ;;  %v3426_v52 = vpack.i.bf16 %v2375_v57, %v2322_v22 }
 0x2c5   : > { %3407 = vrot.lane.b32.xlu2 %v3406_v47, %s3510_s6 }
 0x2ca   : > { %3422 = vrot.lane.b32.xlu0 %v3421_v44, %s3511_s7 }
 0x2cb   : > { %v3363_v31 = vpop.permute.xlu1 %3362 }
 0x2cc   : > { %v3365_v16 = vunpack.i.h.bf16 %v3363_v31  ;;  %v3364_v59 = vunpack.i.l.bf16 %v3363_v31 }
 0x2cd   : > { %3427 = vrot.lane.b32.xlu2 %v3426_v52, %s3512_s8 }
 0x2ce   : > { %v2238_v12 = vsel %vm2236_vm10, %v2219_v35, %v3365_v16  ;;  %v2237_v56 = vsel %vm2236_vm10, %v2218_v42, %v3364_v59 }
 0x2cf   : > { %v2257_v33 = vsel %vm2255_vm11, %v2238_v12, %v4693_v34  ;;  %v4960_v25 = vsel %vm2255_vm11, %v2237_v56, %v3374_v28  ;;  %v3084_v34 = vld [vmem:[%s5307_s1 + $0x10] sm:$0xff] }
 0x2d0   : > { %v2300_v0 = vrot.slane %v2257_v33, 1  ;;  %v2299_v55 = vrot.slane %v4960_v25, 1  ;;  %3096 = vmatpush.bf16.msra.mxu2 %v3084_v34  ;;  %3097 = vmatpush.bf16.msra.mxu3 %v3084_v34 }
 0x2d1   : > { %2473 = vmatpush.bf16.msra.mxu0 %v3084_v34 }
 0x2d2   : > { %v2301_v45 = vsel %vm2298_vm12, %v2299_v55, %v2300_v0 }
 0x2d3   : > { %v3416_v53 = vpack.i.bf16 %v4887_v17, %v2301_v45 }
 0x2d4   : > { %3098 = vmatpush.bf16.msra.mxu2 %v3083_v14  ;;  %3099 = vmatpush.bf16.msra.mxu3 %v3083_v14 }
 0x2d5   : > { %3417 = vrot.lane.b32.xlu1 %v3416_v53, %s3510_s6  ;;  %3432 = vrot.lane.b32.xlu2 %v3431_v21, %s3512_s8 }
 0x2d6   : > { %2474 = vmatpush.bf16.msra.mxu0 %v3083_v14 }
 0x2d8   : > { %3100 = vmatpush.bf16.msra.mxu2 %v3082_v51  ;;  %3101 = vmatpush.bf16.msra.mxu3 %v3082_v51 }
 0x2da   : > { %2475 = vmatpush.bf16.msra.mxu0 %v3082_v51 }
 0x2fe   : > { %v3378_v17 = vpop.permute.xlu1 %3377  ;;  %v3398_v3 = vpop.permute.xlu2 %3397 }
 0x2ff   : > { %v3380_v21 = vunpack.i.h.bf16 %v3378_v17  ;;  %v3379_v7 = vunpack.i.l.bf16 %v3378_v17  ;;  %v3400_v48 = vunpack.i.h.bf16 %v3398_v3  ;;  %v3399_v40 = vunpack.i.l.bf16 %v3398_v3 }
 0x301   : > { %v2404_v37 = vsel %vm2400_vm13, %v4702_v20, %v3380_v21  ;;  %v2403_v27 = vsel %vm2400_vm13, %v4705_v43, %v3379_v7 }
 0x313   : > { %v3383_v8 = vpop.permute.xlu0 %3382 }
 0x314   : > { %v3385_v46 = vunpack.i.h.bf16 %v3383_v8  ;;  %v3384_v23 = vunpack.i.l.bf16 %v3383_v8 }
 0x316   : > { %v2412_v62 = vsel %vm2409_vm14, %v2403_v27, %v3384_v23  ;;  %v2413_v19 = vsel %vm2409_vm14, %v2404_v37, %v3385_v46 }
 0x317   : > { %v2421_v18 = vsel %vm2418_vm15, %v2412_v62, %v3399_v40  ;;  %v2422_v13 = vsel %vm2418_vm15, %v2413_v19, %v3400_v48 }
 0x318   : > { %v2428_v38 = vpack.c.bf16 %v2422_v13, %v2421_v18 }
 0x31a   : > { %3044 = vmatmul.msk.bf16.vlgmr.msra.gmra.mxu2 %vm2455_vm0, %v2428_v38 }
 0x31f   : > { %v3408_v24 = vpop.permute.xlu2 %3407 }
 0x320   : > { %v3410_v54 = vunpack.i.h.bf16 %v3408_v24  ;;  %v3409_v50 = vunpack.i.l.bf16 %v3408_v24 }
 0x322   : > { %v2408_v11 = vsel %vm2400_vm13, %v4932_v4, %v3410_v54  ;;  %v2407_v22 = vsel %vm2400_vm13, %v4884_v61, %v3409_v50 }
 0x327   : > { %v3428_v63 = vpop.permute.xlu2 %3427 }
 0x328   : > { %v3388_v39 = vpop.permute.xlu0 %3387  ;;  %v3429_v57 = vunpack.i.l.bf16 %v3428_v63 }
 0x329   : > { %v3390_v36 = vunpack.i.h.bf16 %v3388_v39  ;;  %v3389_v41 = vunpack.i.l.bf16 %v3388_v39 }
 0x32b   : > { %v3403_v15 = vpop.permute.xlu1 %3402 }
 0x32c   : > { %v3405_v60 = vunpack.i.h.bf16 %v3403_v15  ;;  %v3404_v20 = vunpack.i.l.bf16 %v3403_v15 }
 0x32e   : > { %v2406_v43 = vsel %vm2400_vm13, %v4881_v10, %v3405_v60  ;;  %v2405_v2 = vsel %vm2400_vm13, %v4785_v9, %v3404_v20  ;;  %v3430_v9 = vunpack.i.h.bf16 %v3428_v63  ;;  %v5048_v63 = vsel %vm2600_vm4, %v4530_v30, 0.0 }
 0x32f   : > { %v2414_v10 = vsel %vm2409_vm14, %v2405_v2, %v3389_v41  ;;  %v2415_v44 = vsel %vm2409_vm14, %v2406_v43, %v3390_v36  ;;  %v3433_v12 = vpop.permute.xlu2 %3432  ;;  %2699 = vrot.lane.b32.xlu1 %v5048_v63, %s3506_s18 }
 0x330   : > { %v3435_v53 = vunpack.i.h.bf16 %v3433_v12  ;;  %v3434_v1 = vunpack.i.l.bf16 %v3433_v12 }
 0x333   : > { %v3413_v26 = vpop.permute.xlu1 %3412 }
 0x334   : > { %v3393_v47 = vpop.permute.xlu0 %3392  ;;  %v3415_v29 = vunpack.i.h.bf16 %v3413_v26  ;;  %v3414_v5 = vunpack.i.l.bf16 %v3413_v26 }
 0x335   : > { %v3395_v58 = vunpack.i.h.bf16 %v3393_v47  ;;  %v3394_v49 = vunpack.i.l.bf16 %v3393_v47 }
 0x336   : > { %v2423_v31 = vsel %vm2418_vm15, %v2414_v10, %v3414_v5  ;;  %v2424_v16 = vsel %vm2418_vm15, %v2415_v44, %v3415_v29 }
 0x337   : > { %v2416_v4 = vsel %vm2409_vm14, %v2407_v22, %v3394_v49  ;;  %v2417_v59 = vsel %vm2409_vm14, %v2408_v11, %v3395_v58  ;;  %v2429_v61 = vpack.c.bf16 %v2424_v16, %v2423_v31 }
 0x338   : > { %v2425_v42 = vsel %vm2418_vm15, %v2416_v4, %v3429_v57  ;;  %v2426_v28 = vsel %vm2418_vm15, %v2417_v59, %v3430_v9 }
 0x339   : > { %v2430_v35 = vpack.c.bf16 %v2426_v28, %v2425_v42  ;;  %3045 = vmatmul.msk.bf16.gmra.mxu2 %vm2455_vm0, %v2429_v61 }
 0x33b   : > { %3046 = vmatmul.msk.bf16.vlgmr.msra.gmra.mxu3 %vm2455_vm0, %v2430_v35 }
 0x33c   : > { %v3423_v52 = vpop.permute.xlu0 %3422 }
 0x33d   : > { %v3425_v55 = vunpack.i.h.bf16 %v3423_v52  ;;  %v3424_v45 = vunpack.i.l.bf16 %v3423_v52 }
 0x347   : > { %v3418_v56 = vpop.permute.xlu1 %3417 }
 0x348   : > { %v3420_v33 = vunpack.i.h.bf16 %v3418_v56  ;;  %v3419_v0 = vunpack.i.l.bf16 %v3418_v56 }
 0x34a   : > { %v2402_v34 = vsel %vm2400_vm13, %v4869_v32, %v3420_v33  ;;  %v2401_v14 = vsel %vm2400_vm13, %v4960_v25, %v3419_v0 }
 0x34b   : > { %v2410_v51 = vsel %vm2409_vm14, %v2401_v14, %v3424_v45  ;;  %v2411_v17 = vsel %vm2409_vm14, %v2402_v34, %v3425_v55 }
 0x34c   : > { %v2419_v21 = vsel %vm2418_vm15, %v2410_v51, %v3434_v1  ;;  %v2420_v7 = vsel %vm2418_vm15, %v2411_v17, %v3435_v53 }
 0x34d   : > { %v2427_v3 = vpack.c.bf16 %v2420_v7, %v2419_v21 }
 0x34f   : > { %3043 = vmatmul.msk.bf16.vlgmr.msra.gmra.mxu0 %vm2455_vm0, %v2427_v3 }
 0x39d   : > { %v2482_v8 = vpop.f32.mrf.mxu2 }
 0x39e   : > { %v2499_v46 = vmul.f32 0.2, %v2482_v8 }
 0x3a0   : > { %v5019_v23 = vmax.f32 %v2482_v8, %v2499_v46 }
 0x3a2   : > { %v2613_v32 = vrot.slane %v5019_v23, 2  ;;  %v2614_v48 = vrot.slane %v5019_v23, 4  ;;  %v2615_v25 = vrot.slane %v5019_v23, 6  ;;  %v2626_v40 = vperm.slane %v5019_v23, 1 }
 0x3a4   : > { %v2627_v37 = vperm.slane %v2613_v32, 1  ;;  %v2628_v27 = vperm.slane %v2614_v48, 1  ;;  %v2629_v18 = vperm.slane %v2615_v25, 1 }
 0x3a5   : > { %v2484_v62 = vpop.f32.mrf.mxu2 }
 0x3a6   : > { %v2500_v19 = vmul.f32 0.2, %v2484_v62  ;;  %v2641_v13 = vsel %vm1562_vm1, %v2627_v37, %v2626_v40 }
 0x3a7   : > { %v2642_v38 = vsel %vm1564_vm2, %v2628_v27, %v2641_v13 }
 0x3a8   : > { %v5033_v24 = vmax.f32 %v2484_v62, %v2500_v19  ;;  %v2643_v39 = vsel %vm1566_vm3, %v2629_v18, %v2642_v38 }
 0x3a9   : > { %v2655_v15 = vsel %vm1640_vm7, 0.0, %v2643_v39 }
 0x3aa   : > { %2721 = vrot.lane.b32.xlu2 %v2655_v15, %s3510_s6  ;;  %v2520_v60 = vrot.slane %v5033_v24, 2  ;;  %v2521_v20 = vrot.slane %v5033_v24, 4  ;;  %v2522_v54 = vrot.slane %v5033_v24, 6  ;;  %v2571_v50 = vperm.slane %v5033_v24, 0 }
 0x3ac   : > { %v2572_v43 = vperm.slane %v2520_v60, 0  ;;  %v2573_v2 = vperm.slane %v2521_v20, 0  ;;  %v2574_v36 = vperm.slane %v2522_v54, 0 }
 0x3ae   : > { %v2586_v41 = vsel %vm1718_vm8, %v2572_v43, %v2571_v50 }
 0x3af   : > { %v2587_v26 = vsel %vm1562_vm1, %v2573_v2, %v2586_v41 }
 0x3b0   : > { %v2588_v11 = vsel %vm1564_vm2, %v2574_v36, %v2587_v26 }
 0x3b1   : > { %v2603_v22 = vsel %vm2600_vm4, %v2588_v11, 0.0 }
 0x3b2   : > { %2703 = vrot.lane.b32.xlu2 %v2603_v22, %s3506_s18 }
 0x3bc   : > { %v2487_v47 = vpop.f32.mrf.mxu2 }
 0x3bd   : > { %v2501_v30 = vmul.f32 0.2, %v2487_v47 }
 0x3be   : > { %v5059_v29 = vpop.f32.mrf.mxu3 }
 0x3bf   : > { %v5061_v5 = vmax.f32 %v2487_v47, %v2501_v30  ;;  %v2503_v31 = vmul.f32 0.2, %v5059_v29 }
 0x3c1   : > { %v2616_v49 = vrot.slane %v5061_v5, 2  ;;  %v2617_v57 = vrot.slane %v5061_v5, 4  ;;  %v2618_v4 = vrot.slane %v5061_v5, 6  ;;  %v2630_v56 = vperm.slane %v5061_v5, 1 }
 0x3c2   : > { %v2666_v33 = vperm.slane %v5061_v5, 0 }
 0x3c3   : > { %v2631_v59 = vperm.slane %v2616_v49, 1  ;;  %v2667_v35 = vperm.slane %v2616_v49, 0  ;;  %v2632_v45 = vperm.slane %v2617_v57, 1  ;;  %v2668_v53 = vperm.slane %v2617_v57, 0 }
 0x3c4   : > { %v2489_v9 = vpop.f32.mrf.mxu2  ;;  %v2669_v51 = vperm.slane %v2618_v4, 0 }
 0x3c5   : > { %v2502_v52 = vmul.f32 0.2, %v2489_v9  ;;  %v2644_v14 = vsel %vm1562_vm1, %v2631_v59, %v2630_v56  ;;  %v2680_v3 = vsel %vm1718_vm8, %v2667_v35, %v2666_v33  ;;  %v2633_v56 = vperm.slane %v2618_v4, 1 }
 0x3c6   : > { %v2494_v58 = vpop.f32.mrf.mxu3  ;;  %v2681_v47 = vsel %vm1562_vm1, %v2668_v53, %v2680_v3  ;;  %v2645_v57 = vsel %vm1564_vm2, %v2632_v45, %v2644_v14  ;;  %v2662_v14 = vperm.slane %v5019_v23, 0 }
 0x3c7   : > { %v2504_v10 = vmul.f32 0.2, %v2494_v58  ;;  %v5081_v8 = vmax.f32 %v2489_v9, %v2502_v52  ;;  %v2682_v35 = vsel %vm1564_vm2, %v2669_v51, %v2681_v47  ;;  %v2511_v52 = vmax.f32 %v5059_v29, %v2503_v31 }
 0x3c8   : > { %v2692_v29 = vsel %vm2600_vm4, %v2682_v35, 0.0 }
 0x3c9   : > { %v5064_v44 = vmax.f32 %v2494_v58, %v2504_v10  ;;  %v2523_v30 = vrot.slane %v5081_v8, 2  ;;  %v2524_v33 = vrot.slane %v5081_v8, 4  ;;  %v2575_v4 = vperm.slane %v5081_v8, 0 }
 0x3cb   : > { %v2526_v42 = vrot.slane %v5064_v44, 2  ;;  %v2527_v28 = vrot.slane %v5064_v44, 4  ;;  %v2528_v12 = vrot.slane %v5064_v44, 6  ;;  %v2579_v1 = vperm.slane %v5064_v44, 0 }
 0x3cc   : > { %v2477_v16 = vpop.f32.mrf.mxu0 }
 0x3cd   : > { %v2497_v61 = vmul.f32 0.2, %v2477_v16  ;;  %v2580_v55 = vperm.slane %v2526_v42, 0  ;;  %v2581_v34 = vperm.slane %v2527_v28, 0  ;;  %v2582_v40 = vperm.slane %v2528_v12, 0 }
 0x3cf   : > { %v2505_v0 = vmax.f32 %v2477_v16, %v2497_v61  ;;  %v2592_v37 = vsel %vm1718_vm8, %v2580_v55, %v2579_v1  ;;  %v2576_v1 = vperm.slane %v2523_v30, 0 }
 0x3d0   : > { %v2593_v50 = vsel %vm1562_vm1, %v2581_v34, %v2592_v37  ;;  %v2646_v34 = vsel %vm1566_vm3, %v2633_v56, %v2645_v57  ;;  %v2619_v37 = vrot.slane %v2511_v52, 2  ;;  %v2533_v56 = vperm.slane %v5033_v24, 1  ;;  %v2700_v24 = vpop.permute.xlu1 %2699 }
 0x3d1   : > { %v2610_v17 = vrot.slane %v2505_v0, 2  ;;  %v2611_v21 = vrot.slane %v2505_v0, 4  ;;  %v2612_v7 = vrot.slane %v2505_v0, 6  ;;  %v2658_v46 = vperm.slane %v2505_v0, 0 }
 0x3d2   : > { %v2622_v19 = vperm.slane %v2505_v0, 1  ;;  %v2594_v41 = vsel %vm1564_vm2, %v2582_v40, %v2593_v50  ;;  %v2663_v0 = vperm.slane %v2613_v32, 0 }
 0x3d3   : > { %v2659_v27 = vperm.slane %v2610_v17, 0  ;;  %v2660_v62 = vperm.slane %v2611_v21, 0  ;;  %v2623_v18 = vperm.slane %v2610_v17, 1  ;;  %v2661_v38 = vperm.slane %v2612_v7, 0 }
 0x3d4   : > { %v2479_v13 = vpop.f32.mrf.mxu0  ;;  %v2624_v39 = vperm.slane %v2611_v21, 1  ;;  %v2625_v15 = vperm.slane %v2612_v7, 1  ;;  %v2605_v22 = vsel %vm2600_vm4, %v2594_v41, 0.0  ;;  %v2525_v17 = vrot.slane %v5081_v8, 6 }
 0x3d5   : > { %v2498_v43 = vmul.f32 0.2, %v2479_v13  ;;  %v2674_v2 = vsel %vm1718_vm8, %v2659_v27, %v2658_v46  ;;  %v2638_v36 = vsel %vm1562_vm1, %v2623_v18, %v2622_v19  ;;  %2707 = vrot.lane.b32.xlu2 %v2605_v22, %s3506_s18  ;;  %v2577_v21 = vperm.slane %v2524_v33, 0 }
 0x3d6   : > { %v2675_v26 = vsel %vm1562_vm1, %v2660_v62, %v2674_v2  ;;  %v2639_v11 = vsel %vm1564_vm2, %v2624_v39, %v2638_v36  ;;  %v2664_v7 = vperm.slane %v2614_v48, 0  ;;  %v2589_v46 = vsel %vm1718_vm8, %v2576_v1, %v2575_v4 }
 0x3d7   : > { %v5095_v5 = vmax.f32 %v2479_v13, %v2498_v43  ;;  %v2676_v58 = vsel %vm1564_vm2, %v2661_v38, %v2675_v26  ;;  %v2640_v49 = vsel %vm1566_vm3, %v2625_v15, %v2639_v11  ;;  %v2677_v40 = vsel %vm1718_vm8, %v2663_v0, %v2662_v14 }
 0x3d8   : > { %v2690_v10 = vsel %vm2600_vm4, %v2676_v58, 0.0  ;;  %v2654_v9 = vsel %vm1640_vm7, 0.0, %v2640_v49  ;;  %v2656_v27 = vsel %vm1640_vm7, 0.0, %v2646_v34  ;;  %v2590_v19 = vsel %vm1562_vm1, %v2577_v21, %v2589_v46 }
 0x3d9   : > { %v2517_v16 = vrot.slane %v5095_v5, 2  ;;  %2738 = vrot.lane.b32.xlu1 %v2690_v10, %s3513_s22  ;;  %2719 = vrot.lane.b32.xlu0 %v2654_v9, %s3510_s6  ;;  %v2518_v59 = vrot.slane %v5095_v5, 4  ;;  %v2519_v61 = vrot.slane %v5095_v5, 6  ;;  %v2567_v55 = vperm.slane %v5095_v5, 0 }
 0x3da   : > { %v2678_v48 = vsel %vm1562_vm1, %v2664_v7, %v2677_v40  ;;  %v2620_v18 = vrot.slane %v2511_v52, 4  ;;  %v2578_v13 = vperm.slane %v2525_v17, 0  ;;  %v2665_v38 = vperm.slane %v2615_v25, 0 }
 0x3db   : > { %v2568_v45 = vperm.slane %v2517_v16, 0  ;;  %v2569_v53 = vperm.slane %v2518_v59, 0  ;;  %v2570_v31 = vperm.slane %v2519_v61, 0  ;;  %v2671_v39 = vperm.slane %v2619_v37, 0 }
 0x3dc   : > { %v2635_v15 = vperm.slane %v2619_v37, 1  ;;  %v2591_v50 = vsel %vm1564_vm2, %v2578_v13, %v2590_v19  ;;  %v2679_v43 = vsel %vm1564_vm2, %v2665_v38, %v2678_v48  ;;  %v2670_v2 = vperm.slane %v2511_v52, 0 }
 0x3dd   : > { %v2583_v32 = vsel %vm1718_vm8, %v2568_v45, %v2567_v55  ;;  %2742 = vrot.lane.b32.xlu2 %v2692_v29, %s3513_s22  ;;  %v2634_v36 = vperm.slane %v2511_v52, 1  ;;  %v2672_v41 = vperm.slane %v2620_v18, 0  ;;  %v2636_v26 = vperm.slane %v2620_v18, 1 }
 0x3de   : > { %v2584_v51 = vsel %vm1562_vm1, %v2569_v53, %v2583_v32  ;;  %v2621_v11 = vrot.slane %v2511_v52, 6  ;;  %v2683_v22 = vsel %vm1718_vm8, %v2671_v39, %v2670_v2  ;;  %v2604_v23 = vsel %vm2600_vm4, %v2591_v50, 0.0 }
 0x3df   : > { %v2585_v3 = vsel %vm1564_vm2, %v2570_v31, %v2584_v51  ;;  %v2647_v47 = vsel %vm1562_vm1, %v2635_v15, %v2634_v36  ;;  %v2691_v25 = vsel %vm2600_vm4, %v2679_v43, 0.0  ;;  %v2684_v58 = vsel %vm1562_vm1, %v2672_v41, %v2683_v22 }
 0x3e0   : > { %v2602_v62 = vsel %vm2600_vm4, %v2585_v3, 0.0  ;;  %v2648_v49 = vsel %vm1564_vm2, %v2636_v26, %v2647_v47  ;;  %v2673_v10 = vperm.slane %v2621_v11, 0  ;;  %v2637_v9 = vperm.slane %v2621_v11, 1 }
 0x3e1   : > { %2723 = vrot.lane.b32.xlu1 %v2656_v27, %s3510_s6  ;;  %2701 = vrot.lane.b32.xlu0 %v2602_v62, %s3506_s18  ;;  %v2541_v52 = vperm.slane %v5064_v44, 1  ;;  %v2534_v0 = vperm.slane %v2520_v60, 1  ;;  %v2542_v53 = vperm.slane %v2526_v42, 1  ;;  %v2543_v1 = vperm.slane %v2527_v28, 1 }
 0x3e2   : > { %v2685_v57 = vsel %vm1564_vm2, %v2673_v10, %v2684_v58  ;;  %v2649_v35 = vsel %vm1566_vm3, %v2637_v9, %v2648_v49  ;;  %v2544_v29 = vperm.slane %v2528_v12, 1  ;;  %v2562_v4 = vsel %vm1640_vm7, 0.0, %v4206_v6 }
 0x3e3   : > { %v2693_v55 = vsel %vm2600_vm4, %v2685_v57, 0.0  ;;  %v2657_v45 = vsel %vm1640_vm7, 0.0, %v2649_v35  ;;  %v2548_v34 = vsel %vm1562_vm1, %v2534_v0, %v2533_v56  ;;  %v2554_v31 = vsel %vm1562_vm1, %v2542_v53, %v2541_v52  ;;  %v3093_v53 = vld [vmem:[%s5308_s2 + $0x38] sm:$0xff] }
 0x3e4   : > { %v2555_v28 = vsel %vm1564_vm2, %v2543_v1, %v2554_v31  ;;  %v2530_v44 = vperm.slane %v2517_v16, 1  ;;  %v2753_v12 = vsel %vm2236_vm10, %v2562_v4, %v2700_v24  ;;  %v2529_v21 = vperm.slane %v5095_v5, 1  ;;  %2908 = vmatpush.bf16.msra.mxu1 %v3093_v53  ;;  %v3092_v1 = vld [vmem:[%s5308_s2 + $0x30] sm:$0xff] }
 0x3e5   : > { %2746 = vrot.lane.b32.xlu2 %v5048_v63, %s3513_s22  ;;  %v2535_v63 = vperm.slane %v2521_v20, 1  ;;  %v2536_v20 = vperm.slane %v2522_v54, 1  ;;  %v2556_v32 = vsel %vm1566_vm3, %v2544_v29, %v2555_v28  ;;  %v2531_v6 = vperm.slane %v2518_v59, 1  ;;  %v3089_v29 = vld [vmem:[%s5308_s2 + $0x18] sm:$0xff]  ;;  %v3088_v31 = vld [vmem:[%s5308_s2 + $0x10] sm:$0xff] }
 0x3e6   : > { %v2545_v40 = vsel %vm1562_vm1, %v2530_v44, %v2529_v21  ;;  %v2532_v27 = vperm.slane %v2519_v61, 1  ;;  %v2538_v18 = vperm.slane %v2523_v30, 1  ;;  %v2537_v59 = vperm.slane %v5081_v8, 1 }
 0x3e7   : > { %v2549_v60 = vsel %vm1564_vm2, %v2535_v63, %v2548_v34  ;;  %v2546_v16 = vsel %vm1564_vm2, %v2531_v6, %v2545_v40  ;;  %v2539_v15 = vperm.slane %v2524_v33, 1  ;;  %v2540_v36 = vperm.slane %v2525_v17, 1 }
 0x3e8   : > { %v2550_v42 = vsel %vm1566_vm3, %v2536_v20, %v2549_v60  ;;  %v2547_v48 = vsel %vm1566_vm3, %v2532_v27, %v2546_v16  ;;  %v2551_v5 = vsel %vm1562_vm1, %v2538_v18, %v2537_v59  ;;  %v2566_v9 = vsel %vm1640_vm7, 0.0, %v2556_v32  ;;  %2909 = vmatpush.bf16.msra.mxu1 %v3092_v1  ;;  %v3091_v20 = vld [vmem:[%s5308_s2 + $0x28] sm:$0xff]  ;;  %v3090_v60 = vld [vmem:[%s5308_s2 + $0x20] sm:$0xff] }
 0x3e9   : > { %2705 = vrot.lane.b32.xlu1 %v2604_v23, %s3506_s18  ;;  %2740 = vrot.lane.b32.xlu0 %v2691_v25, %s3513_s22  ;;  %v2563_v13 = vsel %vm1640_vm7, 0.0, %v2547_v48  ;;  %v2552_v2 = vsel %vm1564_vm2, %v2539_v15, %v2551_v5  ;;  %v2564_v26 = vsel %vm1640_vm7, 0.0, %v2550_v42  ;;  %vm2839_vm1 = vcmask 785408   ;;  %v3087_v32 = vld [vmem:[%s5308_s2 + $0x8] sm:$0xff] }
 0x3ea   : > { %v2553_v33 = vsel %vm1566_vm3, %v2540_v36, %v2552_v2  ;;  %vm2940_vm2 = vcmask 125952   ;;  %vm2958_vm3 = vcmask 0  }
 0x3eb   : > { %v2565_v47 = vsel %vm1640_vm7, 0.0, %v2553_v33 }
 0x3ec   : > { %2910 = vmatpush.bf16.msra.mxu1 %v3091_v20 }
 0x3f0   : > { %2911 = vmatpush.bf16.msra.mxu1 %v3090_v60 }
 0x3f1   : > { %2744 = vrot.lane.b32.xlu1 %v2693_v55, %s3513_s22  ;;  %2725 = vrot.lane.b32.xlu0 %v2657_v45, %s3510_s6 }
 0x3f4   : > { %2912 = vmatpush.bf16.msra.mxu1 %v3089_v29 }
 0x3f8   : > { %2913 = vmatpush.bf16.msra.mxu1 %v3088_v31 }
 0x3f9   : > { %2727 = vrot.lane.b32.xlu0 %v2562_v4, %s3510_s6 }
 0x3fc   : > { %2914 = vmatpush.bf16.msra.mxu1 %v3087_v32 }
 0x404   : > { %v2722_v54 = vpop.permute.xlu2 %2721 }
 0x40c   : > { %v2704_v37 = vpop.permute.xlu2 %2703 }
 0x40d   : > { %v2755_v11 = vsel %vm2236_vm10, %v2564_v26, %v2704_v37 }
 0x42f   : > { %v2708_v38 = vpop.permute.xlu2 %2707 }
 0x430   : > { %v2757_v35 = vsel %vm2236_vm10, %v2566_v9, %v2708_v38 }
 0x437   : > { %v2743_v22 = vpop.permute.xlu2 %2742 }
 0x43f   : > { %v2747_v57 = vpop.permute.xlu2 %2746 }
 0x44b   : > { %v2739_v14 = vpop.permute.xlu1 %2738  ;;  %v2720_v51 = vpop.permute.xlu0 %2719 }
 0x44c   : > { %v2758_v7 = vsel %vm2400_vm13, %v2753_v12, %v2720_v51  ;;  %v3086_v12 = vld [vmem:[%s5308_s2] sm:$0xff] }
 0x44d   : > { %v5194_v3 = vsel %vm2763_vm5, %v2758_v7, %v2739_v14  ;;  %2915 = vmatpush.bf16.msra.mxu1 %v3086_v12 }
 0x44e   : > { %v2789_v46 = vrot.slane %v5194_v3, 1 }
 0x450   : > { %2793 = vrot.lane.b32.xlu1 %v2789_v46, %s3511_s7 }
 0x453   : > { %v2724_v62 = vpop.permute.xlu1 %2723  ;;  %v2702_v19 = vpop.permute.xlu0 %2701 }
 0x454   : > { %v2754_v39 = vsel %vm2236_vm10, %v2563_v13, %v2702_v19  ;;  %v2760_v23 = vsel %vm2400_vm13, %v2755_v11, %v2724_v62  ;;  %v2934_v11 = vld [vmem:[%s5309_s3 + $0x8] sm:$0xf] }
 0x455   : > { %v2759_v43 = vsel %vm2400_vm13, %v2754_v39, %v2722_v54  ;;  %v2766_v10 = vsel %vm2763_vm5, %v2760_v23, %v2743_v22  ;;  %v2935_v23 = vld [vmem:[%s5309_s3 + $0xc] sm:$0xf] }
 0x456   : > { %v2791_v55 = vrot.slane %v2766_v10, 1 }
 0x45b   : > { %v2706_v61 = vpop.permute.xlu1 %2705  ;;  %v2741_v50 = vpop.permute.xlu0 %2740 }
 0x45c   : > { %v5216_v30 = vsel %vm2763_vm5, %v2759_v43, %v2741_v50  ;;  %v2756_v8 = vsel %vm2236_vm10, %v2565_v47, %v2706_v61  ;;  %v2933_v43 = vld [vmem:[%s5309_s3 + $0x4] sm:$0xf] }
 0x45d   : > { %2806 = vrot.lane.b32.xlu0 %v5216_v30, %s3514_s24  ;;  %v2790_v41 = vrot.slane %v5216_v30, 1 }
 0x45f   : > { %2819 = vrot.lane.b32.xlu2 %v2790_v41, %s3515_s26 }
 0x463   : > { %v2745_v17 = vpop.permute.xlu1 %2744  ;;  %v2726_v25 = vpop.permute.xlu0 %2725 }
 0x464   : > { %v2761_v58 = vsel %vm2400_vm13, %v2756_v8, %v2726_v25 }
 0x465   : > { %2795 = vrot.lane.b32.xlu0 %v2790_v41, %s3511_s7  ;;  %v2767_v49 = vsel %vm2763_vm5, %v2761_v58, %v2745_v17 }
 0x466   : > { %2810 = vrot.lane.b32.xlu1 %v2767_v49, %s3514_s24  ;;  %v2792_v56 = vrot.slane %v2767_v49, 1 }
 0x467   : > { %2808 = vrot.lane.b32.xlu2 %v2766_v10, %s3514_s24 }
 0x46b   : > { %v2728_v63 = vpop.permute.xlu0 %2727 }
 0x46c   : > { %v2762_v52 = vsel %vm2400_vm13, %v2757_v35, %v2728_v63 }
 0x46d   : > { %v2768_v0 = vsel %vm2763_vm5, %v2762_v52, %v2747_v57 }
 0x46e   : > { %2799 = vrot.lane.b32.xlu1 %v2792_v56, %s3511_s7  ;;  %2812 = vrot.lane.b32.xlu0 %v2768_v0, %s3514_s24  ;;  %v2818_v45 = vrot.slane %v2768_v0, 1 }
 0x46f   : > { %2797 = vrot.lane.b32.xlu2 %v2791_v55, %s3511_s7 }
 0x476   : > { %2821 = vrot.lane.b32.xlu1 %v2791_v55, %s3515_s26  ;;  %2823 = vrot.lane.b32.xlu0 %v2792_v56, %s3515_s26 }
 0x477   : > { %2825 = vrot.lane.b32.xlu2 %v2818_v45, %s3515_s26 }
 0x4b9   : > { %v2820_v34 = vpop.permute.xlu2 %2819 }
 0x4c1   : > { %v2809_v28 = vpop.permute.xlu2 %2808 }
 0x4c2   : > { %v2794_v42 = vpop.permute.xlu1 %2793 }
 0x4c3   : > { %v2831_v4 = vsel %vm2409_vm14, %v5194_v3, %v2794_v42 }
 0x4c9   : > { %v2798_v51 = vpop.permute.xlu2 %2797 }
 0x4ca   : > { %v2833_v27 = vsel %vm2409_vm14, %v2766_v10, %v2798_v51 }
 0x4cf   : > { %v2807_v24 = vpop.permute.xlu0 %2806 }
 0x4d0   : > { %v2835_v54 = vsel %vm2455_vm0, %v2831_v4, %v2807_v24 }
 0x4d1   : > { %v2840_v44 = vsel %vm2839_vm1, %v2835_v54, %v2820_v34  ;;  %v2826_v3 = vpop.permute.xlu2 %2825 }
 0x4d2   : > { %2848 = vst [vmem:[#allocation1] ss:$2 sm:$0xff] %v2840_v44 }
 0x4d7   : > { %v2796_v14 = vpop.permute.xlu0 %2795 }
 0x4d8   : > { %v2811_v21 = vpop.permute.xlu1 %2810  ;;  %v2832_v16 = vsel %vm2409_vm14, %v5216_v30, %v2796_v14  ;;  %v2932_v30 = vld [vmem:[%s5309_s3] sm:$0xf] }
 0x4d9   : > { %v2837_v62 = vsel %vm2455_vm0, %v2833_v27, %v2811_v21  ;;  %v2836_v48 = vsel %vm2455_vm0, %v2832_v16, %v2809_v28 }
 0x4e0   : > { %v2800_v7 = vpop.permute.xlu1 %2799  ;;  %v2813_v6 = vpop.permute.xlu0 %2812 }
 0x4e1   : > { %v2834_v46 = vsel %vm2409_vm14, %v2767_v49, %v2800_v7 }
 0x4e2   : > { %v2838_v40 = vsel %vm2455_vm0, %v2834_v46, %v2813_v6 }
 0x4e3   : > { %v2843_v37 = vsel %vm2839_vm1, %v2838_v40, %v2826_v3 }
 0x4e4   : > { %2854 = vst [vmem:[#allocation1 + $0x11] ss:$2 sm:$0xff] %v2843_v37 }
 0x4e8   : > { %v2822_v19 = vpop.permute.xlu1 %2821  ;;  %v2824_v18 = vpop.permute.xlu0 %2823 }
 0x4e9   : > { %v2841_v59 = vsel %vm2839_vm1, %v2836_v48, %v2822_v19  ;;  %v2842_v13 = vsel %vm2839_vm1, %v2837_v62, %v2824_v18 }
 0x4ea   : > { %2850 = vst [vmem:[#allocation1 + $0x1] ss:$2 sm:$0xff] %v2841_v59 }
 0x4eb   : > { %2852 = vst [vmem:[#allocation1 + $0x10] ss:$2 sm:$0xff] %v2842_v13 }
 0x4f1   : > { %v2855_v38 = vld.sshfl [vmem:[#allocation1] sm:$0xff pattern:$0x75316420] }
 0x4f2   : > { %v2856_v39 = vld.sshfl [vmem:[#allocation1 + $0x10] sm:$0xff pattern:$0x75316420] }
 0x4f3   : > { %v2859_v15 = vpack.c.bf16 %v2856_v39, %v2855_v38 }
 0x4f5   : > { %2916 = vmatmul.bf16.vlgmr.msra.gmra.mxu1 %v2859_v15 }
 0x572   : > { %v2917_v5 = vpop.f32.mrf.mxu1 }
 0x573   : > { %v2922_v61 = vmul.f32 0.2, %v2917_v5 }
 0x575   : > { %v2924_v50 = vmax.f32 %v2917_v5, %v2922_v61 }
 0x577   : > { %v2928_v2 = vrot.slane %v2924_v50, 4  ;;  %v2936_v33 = vmul.f32 %v2932_v30, %v2924_v50 }
 0x579   : > { %v2937_v36 = vmul.f32 %v2933_v43, %v2928_v2  ;;  %v2941_v8 = vsel %vm2940_vm2, %v2936_v33, 0.0 }
 0x57a   : > { %v2919_v41 = vpop.f32.mrf.mxu1 }
 0x57b   : > { %v2923_v26 = vmul.f32 0.2, %v2919_v41  ;;  %v2942_v47 = vsel %vm2940_vm2, %v2937_v36, 0.0 }
 0x57c   : > { %v2943_v58 = vadd.f32 %v2942_v47, %v2941_v8 }
 0x57d   : > { %v2925_v22 = vmax.f32 %v2919_v41, %v2923_v26 }
 0x57f   : > { %v2929_v17 = vrot.slane %v2925_v22, 4  ;;  %v2938_v25 = vmul.f32 %v2934_v11, %v2925_v22 }
 0x581   : > { %v2939_v49 = vmul.f32 %v2935_v23, %v2929_v17  ;;  %v2944_v10 = vsel %vm2940_vm2, %v2938_v25, 0.0 }
 0x582   : > { %v2945_v9 = vadd.f32 %v2944_v10, %v2943_v58 }
 0x583   : > { %v2946_v57 = vsel %vm2940_vm2, %v2939_v49, 0.0 }
 0x584   : > { %v2947_v35 = vadd.f32 %v2946_v57, %v2945_v9 }
 0x586   : > { %2948 = vadd.xlane.f32.xlu1 %v2947_v35 }
 0x5f9   : > { %v2949_v63 = vpop.xlane.xlu1 %2948 }
 0x5fa   : > { %v2950_v52 = vrot.slane %v2949_v63, 4 }
 0x5fc   : > { %v2951_v56 = vadd.f32 %v2950_v52, %v2949_v63 }
 0x5fe   : > { %v2952_v0 = vrot.slane %v2951_v56, 2 }
 0x600   : > { %v2953_v55 = vadd.f32 %v2952_v0, %v2951_v56 }
 0x602   : > { %v2954_v45 = vrot.slane %v2953_v55, 1 }
 0x604   : > { %v2955_v53 = vadd.f32 %v2954_v45, %v2953_v55 }
 0x606   : > { %3102 = vpush %v2955_v53 }
 0x637   : > { %s3103_s5 = spop %3102 }
 0x638   : > { %v2957_v1 = vstv %s3103_s5 }
 0x639   : > { %2959 = vst.msk [vmem:[%s215_s25] sm:$0x1] %vm2958_vm3, %v2957_v1 }
 0x63a PF: > { %p14_p7 = scmp.ge.s32.totalorder %s3563_s20, 4   ;;  %s5470_s15 = smov %s3492_s16 }
 0x63b   : > { %s5471_s16 = smov %s3496_s17  ;;  %s5472_s17 = smov %s3573_s23 }
 0x63c   : > { %s5473_s18 = smov %s3563_s20  ;;  %16 = sbr.rel (!%p14_p7) target bundleno = 3 (0x3), region = 79 }
 0x641   :  { %2977 = vsyncpa [#allocation3], 1 }
 0x642   :  { %2979 = vsyncpa [#allocation3 + $0x1], 1 }

</bundles_post_ra>
